<compile_context>
chip_gen: v6e
topology: v6e:2x2x1
jax: 0.10.0
libtpu: 0.0.40
codegen_flags: <defaults>
</compile_context>

<pallas_src>
import functools
import math

import jax
import jax.numpy as jnp
from jax.experimental import pallas as pl
from jax.experimental.pallas import tpu as pltpu


NUM_HEADS = 3          # hardcoded in the reference BertSelfAttention


# ----------------------------------------------------------------------------
# math helpers (shared by kernel and pure-JAX reference)
# ----------------------------------------------------------------------------
def _erf(x, *, approx_recip=False):
    # TODO(synk): swap for lax.erf once its Mosaic lowering is confirmed; this
    # is Abramowitz–Stegun 7.1.26 (|err| < 1.5e-7) built from VPU/EUP ops only.
    ax = jnp.abs(x)
    denom = 1.0 + 0.3275911 * ax
    t = pl.reciprocal(denom, approx=True) if approx_recip else 1.0 / denom
    poly = ((((1.061405429 * t - 1.453152027) * t + 1.421413741) * t
             - 0.284496736) * t + 0.254829592) * t
    e = 1.0 - poly * jnp.exp(-ax * ax)
    return jnp.where(x < 0, -e, e)


def _gelu(x, *, approx_recip=False):
    # exact (erf-based) gelu, matching the reference PyTorch implementation
    return x * 0.5 * (1.0 + _erf(x * (1.0 / math.sqrt(2.0)),
                                 approx_recip=approx_recip))


def _layer_norm(x, gamma, beta, eps):
    # two-pass (x - mean)^2 variance — avoids the E[x^2]-mean^2 cancellation
    mean = jnp.mean(x, axis=-1, keepdims=True)
    xc = x - mean
    var = jnp.mean(xc * xc, axis=-1, keepdims=True)
    inv = jax.lax.rsqrt(var + eps)          # EUP rsqrt — free slot
    return xc * (inv * gamma) + beta


def _vmem_limit_bytes():
    """Generation-aware VMEM limit: <=64 MiB, >=16 MiB headroom for the
    compiler's internal scratch (v7x has only 64 MiB physical per TC)."""
    try:
        cap = int(pltpu.get_tpu_info().vmem_capacity_bytes)
    except Exception:   # pragma: no cover — older jax / no TPU info available
        return None
    if cap <= 0:
        return None
    return max(16 << 20, min(cap - (16 << 20), 64 << 20))


# ----------------------------------------------------------------------------
# fused Graph_Layer kernel — one grid step per batch element
# ----------------------------------------------------------------------------
def graph_layer_kernel(x_ref, adj_ve_ref, adj_vv_ref, adj_cv_ref,
                       wqkv_ref, bqkv_ref, wo_ref, bo_ref, g1_ref, b1_ref,
                       wi_ref, bi_ref, wout_ref, bout_ref, g2_ref, b2_ref,
                       o_ref, *, nh, dh, scale, eps):
    hid = nh * dh
    x_f32 = x_ref[...].astype(jnp.float32)          # (S, H) residual in f32
    x_bf = x_f32.astype(jnp.bfloat16)

    # ---- BertSelfAttention: fused QKV projection, one MXU matmul (N = 3H) ----
    qkv = jnp.dot(x_bf, wqkv_ref[...], preferred_element_type=jnp.float32)
    qkv = qkv + bqkv_ref[...].astype(jnp.float32)    # (S, 3H)

    adjs = (adj_ve_ref[...], adj_vv_ref[...], adj_cv_ref[...])
    ctx_heads = []
    for h in range(nh):                              # static loop, nh == 3
        qh = qkv[:, h * dh:(h + 1) * dh].astype(jnp.bfloat16)
        kh = qkv[:, hid + h * dh: hid + (h + 1) * dh].astype(jnp.bfloat16)
        vh = qkv[:, 2 * hid + h * dh: 2 * hid + (h + 1) * dh].astype(jnp.bfloat16)

        # scores = Q K^T * scale + graph mask   (mask built in-kernel)
        s = jnp.dot(qh, kh.T, preferred_element_type=jnp.float32) * scale
        s = s + (adjs[h].astype(jnp.float32) - 1.0) * 1000000.0

        # softmax over keys (f32); attention-prob dropout is identity at inference
        s = s - jnp.max(s, axis=-1, keepdims=True)
        p = jnp.exp(s)
        p = p * pl.reciprocal(jnp.sum(p, axis=-1, keepdims=True), approx=True)

        ctx_heads.append(jnp.dot(p.astype(jnp.bfloat16), vh,
                                 preferred_element_type=jnp.float32))
    ctx = jnp.concatenate(ctx_heads, axis=-1)        # (S, H) f32

    # ---- BertSelfOutput: dense + dropout(id) + residual + LayerNorm ----
    attn = jnp.dot(ctx.astype(jnp.bfloat16), wo_ref[...],
                   preferred_element_type=jnp.float32)
    attn = attn + bo_ref[...].astype(jnp.float32) + x_f32
    attn = _layer_norm(attn, g1_ref[...].astype(jnp.float32),
                       b1_ref[...].astype(jnp.float32), eps)

    # ---- BertIntermediate: dense + gelu ----
    inter = jnp.dot(attn.astype(jnp.bfloat16), wi_ref[...],
                    preferred_element_type=jnp.float32)
    inter = _gelu(inter + bi_ref[...].astype(jnp.float32), approx_recip=True)

    # ---- BertOutput: dense + dropout(id) + residual + LayerNorm ----
    out = jnp.dot(inter.astype(jnp.bfloat16), wout_ref[...],
                  preferred_element_type=jnp.float32)
    out = out + bout_ref[...].astype(jnp.float32) + attn
    out = _layer_norm(out, g2_ref[...].astype(jnp.float32),
                      b2_ref[...].astype(jnp.float32), eps)

    o_ref[...] = out.astype(o_ref.dtype)


# ----------------------------------------------------------------------------
# wrapper
# ----------------------------------------------------------------------------
def graph_layer_forward(input_emb, attn_v_e, attn_v_v, attn_c_v, params, *,
                        eps=1e-12):
    batch, seq, hidden = input_emb.shape
    nh = NUM_HEADS
    dh = hidden // nh
    inter_dim = params["wi"].shape[1]

    # Fused QKV weight/bias (one concat per call, tiny) + bf16 matmul operands.
    wqkv = jnp.concatenate(
        [params["wq"], params["wk"], params["wv"]], axis=1).astype(jnp.bfloat16)
    bqkv = jnp.concatenate(
        [params["bq"], params["bk"], params["bv"]]).reshape(1, 3 * hidden
                                                            ).astype(jnp.float32)
    wo = params["wo"].astype(jnp.bfloat16)
    bo = params["bo"].reshape(1, hidden).astype(jnp.float32)
    g1 = params["ln1_g"].reshape(1, hidden).astype(jnp.float32)
    b1 = params["ln1_b"].reshape(1, hidden).astype(jnp.float32)
    wi = params["wi"].astype(jnp.bfloat16)
    bi = params["bi"].reshape(1, inter_dim).astype(jnp.float32)
    wout = params["wout"].astype(jnp.bfloat16)
    bout = params["bout"].reshape(1, hidden).astype(jnp.float32)
    g2 = params["ln2_g"].reshape(1, hidden).astype(jnp.float32)
    b2 = params["ln2_b"].reshape(1, hidden).astype(jnp.float32)

    x = input_emb.astype(jnp.float32)
    # Raw adjacency (f32, exact -(1-A)*1e6 semantics even for non-binary A);
    # the additive mask is built in-kernel, never materialized in HBM.
    a_ve = attn_v_e.astype(jnp.float32)
    a_vv = attn_v_v.astype(jnp.float32)
    a_cv = attn_c_v.astype(jnp.float32)

    # Batched blocks: leading dim squeezed (None) -> kernel sees 2-D refs,
    # einsum-free plain MXU matmuls.
    def batched(shape):
        return pl.BlockSpec((None,) + shape,
                            lambda b, _n=len(shape): (b,) + (0,) * _n)

    # Grid-invariant (resident) operands: constant index_map, DMA'd once.
    def resident(shape):
        return pl.BlockSpec(shape, lambda b, _n=len(shape): (0,) * _n)

    flops = batch * (2 * seq * hidden * 3 * hidden          # QKV
                     + nh * 4 * seq * seq * dh              # attention
                     + 2 * seq * hidden * hidden            # self-output dense
                     + 4 * seq * hidden * inter_dim)        # intermediate+output
    cost = pl.CostEstimate(
        flops=int(flops),
        transcendentals=int(batch * (nh * seq * seq + seq * inter_dim + 4 * seq)),
        bytes_accessed=int(
            batch * seq * hidden * 8                         # x in + out
            + 3 * batch * seq * seq * 4                      # adjacency
            + (4 * hidden * hidden + 2 * hidden * inter_dim) * 2   # weights bf16
            + (4 * hidden + 3 * hidden + inter_dim) * 4))    # biases / LN params

    cp_kwargs = dict(dimension_semantics=("parallel",))
    limit = _vmem_limit_bytes()
    if limit is not None:
        cp_kwargs["vmem_limit_bytes"] = int(limit)

    out = pl.pallas_call(
        functools.partial(graph_layer_kernel, nh=nh, dh=dh,
                          scale=1.0 / math.sqrt(dh), eps=eps),
        out_shape=jax.ShapeDtypeStruct((batch, seq, hidden), jnp.float32),
        grid_spec=pltpu.PrefetchScalarGridSpec(
            num_scalar_prefetch=0,
            grid=(batch,),
            in_specs=[
                batched((seq, hidden)),          # input embedding
                batched((seq, seq)),             # adjacency v_e (head 0)
                batched((seq, seq)),             # adjacency v_v (head 1)
                batched((seq, seq)),             # adjacency c_v (head 2)
                resident((hidden, 3 * hidden)),  # fused QKV weight
                resident((1, 3 * hidden)),       # fused QKV bias
                resident((hidden, hidden)),      # wo
                resident((1, hidden)),           # bo
                resident((1, hidden)),           # LN1 gamma
                resident((1, hidden)),           # LN1 beta
                resident((hidden, inter_dim)),   # wi
                resident((1, inter_dim)),        # bi
                resident((inter_dim, hidden)),   # wout
                resident((1, hidden)),           # bout
                resident((1, hidden)),           # LN2 gamma
                resident((1, hidden)),           # LN2 beta
            ],
            out_specs=batched((seq, hidden)),
        ),
        compiler_params=pltpu.CompilerParams(**cp_kwargs),
        cost_estimate=cost,
    )(x, a_ve, a_vv, a_cv, wqkv, bqkv, wo, bo, g1, b1,
      wi, bi, wout, bout, g2, b2)

    return out[:, 1:12, :], out[:, 0, :]


# ----------------------------------------------------------------------------
# pure-JAX reference mirroring the kernel dtype policy (bf16 operands, f32 accum)
# ----------------------------------------------------------------------------
def reference_forward(input_emb, attn_v_e, attn_v_v, attn_c_v, params, *,
                      eps=1e-12):
    bf16 = jnp.bfloat16
    batch, seq, hidden = input_emb.shape
    nh = NUM_HEADS
    dh = hidden // nh

    def dense(x, w, b):
        return jnp.dot(x.astype(bf16), w.astype(bf16),
                       preferred_element_type=jnp.float32) + b

    def layer_norm(x, g, b):
        mu = jnp.mean(x, axis=-1, keepdims=True)
        xc = x - mu
        var = jnp.mean(xc * xc, axis=-1, keepdims=True)
        return xc * jax.lax.rsqrt(var + eps) * g + b

    mask = jnp.concatenate(
        [(-(1.0 - a) * 1000000.0)[:, None, :, :]
         for a in (attn_v_e, attn_v_v, attn_c_v)], axis=1)

    x2 = input_emb.reshape(batch * seq, hidden).astype(jnp.float32)
    q = dense(x2, params["wq"], params["bq"])
    k = dense(x2, params["wk"], params["bk"])
    v = dense(x2, params["wv"], params["bv"])

    def heads(t):
        return t.reshape(batch, seq, nh, dh).transpose(0, 2, 1, 3).astype(bf16)

    qh, kh, vh = heads(q), heads(k), heads(v)
    s = jnp.einsum("bhqd,bhkd->bhqk", qh, kh, preferred_element_type=jnp.float32)
    s = s / math.sqrt(dh) + mask
    p = jax.nn.softmax(s, axis=-1)
    ctx = jnp.einsum("bhqk,bhkd->bhqd", p.astype(bf16), vh,
                     preferred_element_type=jnp.float32)
    ctx2 = ctx.transpose(0, 2, 1, 3).reshape(batch * seq, hidden)

    attn = layer_norm(dense(ctx2, params["wo"], params["bo"]) + x2,
                      params["ln1_g"], params["ln1_b"])
    inter = _gelu(dense(attn, params["wi"], params["bi"]))
    out = layer_norm(dense(inter, params["wout"], params["bout"]) + attn,
                     params["ln2_g"], params["ln2_b"])

    out = out.reshape(batch, seq, hidden)
    return out[:, 1:12, :], out[:, 0, :]


# ----------------------------------------------------------------------------
# driver
# ----------------------------------------------------------------------------
if __name__ == "__main__":
    # Small synthetic config: batch=2, seq=16 (>= 12 for the verb slice),
    # hidden=48 (3 heads x 16), intermediate=128.
    B, S, HID, INTER = 2, 16, 48, 128
    eps = 1e-12

    key = jax.random.PRNGKey(0)
    keys = jax.random.split(key, 16)

    def w_init(k, shape):
        # nn.Linear weight is (out, in); we store the transpose (in, out).
        return jax.random.normal(k, shape, jnp.float32) / jnp.sqrt(jnp.float32(shape[0]))

    def b_init(k, n):
        return jax.random.normal(k, (n,), jnp.float32) * 0.01

    params = {
        "wq": w_init(keys[0], (HID, HID)), "bq": b_init(keys[1], HID),
        "wk": w_init(keys[2], (HID, HID)), "bk": b_init(keys[3], HID),
        "wv": w_init(keys[4], (HID, HID)), "bv": b_init(keys[5], HID),
        "wo": w_init(keys[6], (HID, HID)), "bo": b_init(keys[7], HID),
        "ln1_g": jnp.ones((HID,), jnp.float32), "ln1_b": jnp.zeros((HID,), jnp.float32),
        "wi": w_init(keys[8], (HID, INTER)), "bi": b_init(keys[9], INTER),
        "wout": w_init(keys[10], (INTER, HID)), "bout": b_init(keys[11], HID),
        "ln2_g": jnp.ones((HID,), jnp.float32), "ln2_b": jnp.zeros((HID,), jnp.float32),
    }

    input_emb = jax.random.normal(keys[12], (B, S, HID), jnp.float32)
    eye = jnp.eye(S, dtype=jnp.float32)

    def adjacency(k):
        a = jax.random.bernoulli(k, 0.6, (B, S, S)).astype(jnp.float32)
        return jnp.maximum(a, eye)        # every node attends to itself

    attn_v_e = adjacency(keys[13])
    attn_v_v = adjacency(keys[14])
    attn_c_v = adjacency(keys[15])

    out_verbs, out_cls = graph_layer_forward(input_emb, attn_v_e, attn_v_v,
                                             attn_c_v, params, eps=eps)
    jax.block_until_ready((out_verbs, out_cls))

    ref_verbs, ref_cls = reference_forward(input_emb, attn_v_e, attn_v_v,
                                           attn_c_v, params, eps=eps)

    assert out_verbs.shape == (B, 11, HID) and out_cls.shape == (B, HID)
    assert jnp.allclose(out_verbs, ref_verbs, atol=2e-2, rtol=2e-2), "verbs mismatch"
    assert jnp.allclose(out_cls, ref_cls, atol=2e-2, rtol=2e-2), "cls mismatch"

    print("KERNEL_OK")
</pallas_src>

<mosaic_0001>
module attributes {stable_mosaic.version = 11 : i64} {
  func.func @graph_layer_kernel(%arg0: i32, %arg1: memref<1x16x48xf32, #tpu.memory_space<vmem>>, %arg2: memref<1x16x16xf32, #tpu.memory_space<vmem>>, %arg3: memref<1x16x16xf32, #tpu.memory_space<vmem>>, %arg4: memref<1x16x16xf32, #tpu.memory_space<vmem>>, %arg5: memref<48x144xbf16, #tpu.memory_space<vmem>>, %arg6: memref<1x144xf32, #tpu.memory_space<vmem>>, %arg7: memref<48x48xbf16, #tpu.memory_space<vmem>>, %arg8: memref<1x48xf32, #tpu.memory_space<vmem>>, %arg9: memref<1x48xf32, #tpu.memory_space<vmem>>, %arg10: memref<1x48xf32, #tpu.memory_space<vmem>>, %arg11: memref<48x128xbf16, #tpu.memory_space<vmem>>, %arg12: memref<1x128xf32, #tpu.memory_space<vmem>>, %arg13: memref<128x48xbf16, #tpu.memory_space<vmem>>, %arg14: memref<1x48xf32, #tpu.memory_space<vmem>>, %arg15: memref<1x48xf32, #tpu.memory_space<vmem>>, %arg16: memref<1x48xf32, #tpu.memory_space<vmem>>, %arg17: memref<1x16x48xf32, #tpu.memory_space<vmem>>) attributes {dimension_semantics = [#tpu.dimension_semantics<parallel>], iteration_bounds = array<i64: 2>, scalar_prefetch = 0 : i64, scratch_operands = 0 : i64, tpu.core_type = #tpu.core_type<tc>, window_params = [{transform_indices = @transform_0, window_bounds = array<i64: 1, 16, 48>}, {transform_indices = @transform_1, window_bounds = array<i64: 1, 16, 16>}, {transform_indices = @transform_2, window_bounds = array<i64: 1, 16, 16>}, {transform_indices = @transform_3, window_bounds = array<i64: 1, 16, 16>}, {pipeline_mode = #tpu.pipeline_mode<synchronous>, transform_indices = @transform_4, window_bounds = array<i64: 48, 144>}, {pipeline_mode = #tpu.pipeline_mode<synchronous>, transform_indices = @transform_5, window_bounds = array<i64: 1, 144>}, {pipeline_mode = #tpu.pipeline_mode<synchronous>, transform_indices = @transform_6, window_bounds = array<i64: 48, 48>}, {pipeline_mode = #tpu.pipeline_mode<synchronous>, transform_indices = @transform_7, window_bounds = array<i64: 1, 48>}, {pipeline_mode = #tpu.pipeline_mode<synchronous>, transform_indices = @transform_8, window_bounds = array<i64: 1, 48>}, {pipeline_mode = #tpu.pipeline_mode<synchronous>, transform_indices = @transform_9, window_bounds = array<i64: 1, 48>}, {pipeline_mode = #tpu.pipeline_mode<synchronous>, transform_indices = @transform_10, window_bounds = array<i64: 48, 128>}, {pipeline_mode = #tpu.pipeline_mode<synchronous>, transform_indices = @transform_11, window_bounds = array<i64: 1, 128>}, {pipeline_mode = #tpu.pipeline_mode<synchronous>, transform_indices = @transform_12, window_bounds = array<i64: 128, 48>}, {pipeline_mode = #tpu.pipeline_mode<synchronous>, transform_indices = @transform_13, window_bounds = array<i64: 1, 48>}, {pipeline_mode = #tpu.pipeline_mode<synchronous>, transform_indices = @transform_14, window_bounds = array<i64: 1, 48>}, {pipeline_mode = #tpu.pipeline_mode<synchronous>, transform_indices = @transform_15, window_bounds = array<i64: 1, 48>}, {transform_indices = @transform_16, window_bounds = array<i64: 1, 16, 48>}]} {
    %c0 = arith.constant 0 : index
    %c0_0 = arith.constant 0 : index
    %c0_1 = arith.constant 0 : index
    %0 = vector.load %arg1[%c0, %c0_0, %c0_1] : memref<1x16x48xf32, #tpu.memory_space<vmem>>, vector<1x16x48xf32>
    %1 = vector.shape_cast %0 : vector<1x16x48xf32> to vector<16x48xf32>
    %2 = arith.truncf %1 : vector<16x48xf32> to vector<16x48xbf16>
    %c0_2 = arith.constant 0 : index
    %c0_3 = arith.constant 0 : index
    %3 = vector.load %arg5[%c0_2, %c0_3] : memref<48x144xbf16, #tpu.memory_space<vmem>>, vector<48x144xbf16>
    %cst = arith.constant dense<0.000000e+00> : vector<16x144xf32>
    %4 = tpu.matmul %2, %3, %cst {dimension_numbers = #tpu.dot_dimension_numbers<[1], [0], [0], [1], [0, 0, 1, 1], [], []>} : vector<16x48xbf16>, vector<48x144xbf16>, vector<16x144xf32> -> vector<16x144xf32>
    %c0_4 = arith.constant 0 : index
    %c0_5 = arith.constant 0 : index
    %5 = vector.load %arg6[%c0_4, %c0_5] : memref<1x144xf32, #tpu.memory_space<vmem>>, vector<1x144xf32>
    %6 = vector.broadcast %5 : vector<1x144xf32> to vector<16x144xf32>
    %7 = arith.addf %4, %6 : vector<16x144xf32>
    %c0_6 = arith.constant 0 : index
    %c0_7 = arith.constant 0 : index
    %c0_8 = arith.constant 0 : index
    %8 = vector.load %arg2[%c0_6, %c0_7, %c0_8] : memref<1x16x16xf32, #tpu.memory_space<vmem>>, vector<1x16x16xf32>
    %9 = vector.shape_cast %8 : vector<1x16x16xf32> to vector<16x16xf32>
    %c0_9 = arith.constant 0 : index
    %c0_10 = arith.constant 0 : index
    %c0_11 = arith.constant 0 : index
    %10 = vector.load %arg3[%c0_9, %c0_10, %c0_11] : memref<1x16x16xf32, #tpu.memory_space<vmem>>, vector<1x16x16xf32>
    %11 = vector.shape_cast %10 : vector<1x16x16xf32> to vector<16x16xf32>
    %c0_12 = arith.constant 0 : index
    %c0_13 = arith.constant 0 : index
    %c0_14 = arith.constant 0 : index
    %12 = vector.load %arg4[%c0_12, %c0_13, %c0_14] : memref<1x16x16xf32, #tpu.memory_space<vmem>>, vector<1x16x16xf32>
    %13 = vector.shape_cast %12 : vector<1x16x16xf32> to vector<16x16xf32>
    %14 = vector.extract_strided_slice %7 {offsets = [0, 0], sizes = [16, 16], strides = [1, 1]} : vector<16x144xf32> to vector<16x16xf32>
    %15 = arith.truncf %14 : vector<16x16xf32> to vector<16x16xbf16>
    %16 = vector.extract_strided_slice %7 {offsets = [0, 48], sizes = [16, 16], strides = [1, 1]} : vector<16x144xf32> to vector<16x16xf32>
    %17 = arith.truncf %16 : vector<16x16xf32> to vector<16x16xbf16>
    %18 = vector.extract_strided_slice %7 {offsets = [0, 96], sizes = [16, 16], strides = [1, 1]} : vector<16x144xf32> to vector<16x16xf32>
    %19 = arith.truncf %18 : vector<16x16xf32> to vector<16x16xbf16>
    %20 = tpu.transpose %17, [1, 0] : vector<16x16xbf16> -> vector<16x16xbf16>
    %cst_15 = arith.constant dense<0.000000e+00> : vector<16x16xf32>
    %21 = tpu.matmul %15, %20, %cst_15 {dimension_numbers = #tpu.dot_dimension_numbers<[1], [0], [0], [1], [0, 0, 1, 1], [], []>} : vector<16x16xbf16>, vector<16x16xbf16>, vector<16x16xf32> -> vector<16x16xf32>
    %cst_16 = arith.constant 2.500000e-01 : f32
    %22 = vector.broadcast %cst_16 : f32 to vector<16x16xf32>
    %23 = arith.mulf %21, %22 : vector<16x16xf32>
    %cst_17 = arith.constant 1.000000e+00 : f32
    %24 = vector.broadcast %cst_17 : f32 to vector<16x16xf32>
    %25 = arith.subf %9, %24 : vector<16x16xf32>
    %cst_18 = arith.constant 1.000000e+06 : f32
    %26 = vector.broadcast %cst_18 : f32 to vector<16x16xf32>
    %27 = arith.mulf %25, %26 : vector<16x16xf32>
    %28 = arith.addf %23, %27 : vector<16x16xf32>
    %cst_19 = arith.constant dense<0xFF800000> : vector<16xf32>
    %29 = vector.multi_reduction <maximumf>, %28, %cst_19 [1] : vector<16x16xf32> to vector<16xf32>
    %30 = vector.shape_cast %29 : vector<16xf32> to vector<16x1xf32>
    %31 = vector.broadcast %30 : vector<16x1xf32> to vector<16x16xf32>
    %32 = arith.subf %28, %31 : vector<16x16xf32>
    %33 = math.exp %32 : vector<16x16xf32>
    %cst_20 = arith.constant dense<0.000000e+00> : vector<16xf32>
    %34 = vector.multi_reduction <add>, %33, %cst_20 [1] : vector<16x16xf32> to vector<16xf32>
    %35 = vector.shape_cast %34 : vector<16xf32> to vector<16x1xf32>
    %36 = tpu.reciprocal %35 {approx = true} : vector<16x1xf32> -> vector<16x1xf32>
    %37 = vector.broadcast %36 : vector<16x1xf32> to vector<16x16xf32>
    %38 = arith.mulf %33, %37 : vector<16x16xf32>
    %39 = arith.truncf %38 : vector<16x16xf32> to vector<16x16xbf16>
    %cst_21 = arith.constant dense<0.000000e+00> : vector<16x16xf32>
    %40 = tpu.matmul %39, %19, %cst_21 {dimension_numbers = #tpu.dot_dimension_numbers<[1], [0], [0], [1], [0, 0, 1, 1], [], []>} : vector<16x16xbf16>, vector<16x16xbf16>, vector<16x16xf32> -> vector<16x16xf32>
    %41 = vector.extract_strided_slice %7 {offsets = [0, 16], sizes = [16, 16], strides = [1, 1]} : vector<16x144xf32> to vector<16x16xf32>
    %42 = arith.truncf %41 : vector<16x16xf32> to vector<16x16xbf16>
    %43 = vector.extract_strided_slice %7 {offsets = [0, 64], sizes = [16, 16], strides = [1, 1]} : vector<16x144xf32> to vector<16x16xf32>
    %44 = arith.truncf %43 : vector<16x16xf32> to vector<16x16xbf16>
    %45 = vector.extract_strided_slice %7 {offsets = [0, 112], sizes = [16, 16], strides = [1, 1]} : vector<16x144xf32> to vector<16x16xf32>
    %46 = arith.truncf %45 : vector<16x16xf32> to vector<16x16xbf16>
    %47 = tpu.transpose %44, [1, 0] : vector<16x16xbf16> -> vector<16x16xbf16>
    %cst_22 = arith.constant dense<0.000000e+00> : vector<16x16xf32>
    %48 = tpu.matmul %42, %47, %cst_22 {dimension_numbers = #tpu.dot_dimension_numbers<[1], [0], [0], [1], [0, 0, 1, 1], [], []>} : vector<16x16xbf16>, vector<16x16xbf16>, vector<16x16xf32> -> vector<16x16xf32>
    %cst_23 = arith.constant 2.500000e-01 : f32
    %49 = vector.broadcast %cst_23 : f32 to vector<16x16xf32>
    %50 = arith.mulf %48, %49 : vector<16x16xf32>
    %cst_24 = arith.constant 1.000000e+00 : f32
    %51 = vector.broadcast %cst_24 : f32 to vector<16x16xf32>
    %52 = arith.subf %11, %51 : vector<16x16xf32>
    %cst_25 = arith.constant 1.000000e+06 : f32
    %53 = vector.broadcast %cst_25 : f32 to vector<16x16xf32>
    %54 = arith.mulf %52, %53 : vector<16x16xf32>
    %55 = arith.addf %50, %54 : vector<16x16xf32>
    %cst_26 = arith.constant dense<0xFF800000> : vector<16xf32>
    %56 = vector.multi_reduction <maximumf>, %55, %cst_26 [1] : vector<16x16xf32> to vector<16xf32>
    %57 = vector.shape_cast %56 : vector<16xf32> to vector<16x1xf32>
    %58 = vector.broadcast %57 : vector<16x1xf32> to vector<16x16xf32>
    %59 = arith.subf %55, %58 : vector<16x16xf32>
    %60 = math.exp %59 : vector<16x16xf32>
    %cst_27 = arith.constant dense<0.000000e+00> : vector<16xf32>
    %61 = vector.multi_reduction <add>, %60, %cst_27 [1] : vector<16x16xf32> to vector<16xf32>
    %62 = vector.shape_cast %61 : vector<16xf32> to vector<16x1xf32>
    %63 = tpu.reciprocal %62 {approx = true} : vector<16x1xf32> -> vector<16x1xf32>
    %64 = vector.broadcast %63 : vector<16x1xf32> to vector<16x16xf32>
    %65 = arith.mulf %60, %64 : vector<16x16xf32>
    %66 = arith.truncf %65 : vector<16x16xf32> to vector<16x16xbf16>
    %cst_28 = arith.constant dense<0.000000e+00> : vector<16x16xf32>
    %67 = tpu.matmul %66, %46, %cst_28 {dimension_numbers = #tpu.dot_dimension_numbers<[1], [0], [0], [1], [0, 0, 1, 1], [], []>} : vector<16x16xbf16>, vector<16x16xbf16>, vector<16x16xf32> -> vector<16x16xf32>
    %68 = vector.extract_strided_slice %7 {offsets = [0, 32], sizes = [16, 16], strides = [1, 1]} : vector<16x144xf32> to vector<16x16xf32>
    %69 = arith.truncf %68 : vector<16x16xf32> to vector<16x16xbf16>
    %70 = vector.extract_strided_slice %7 {offsets = [0, 80], sizes = [16, 16], strides = [1, 1]} : vector<16x144xf32> to vector<16x16xf32>
    %71 = arith.truncf %70 : vector<16x16xf32> to vector<16x16xbf16>
    %72 = vector.extract_strided_slice %7 {offsets = [0, 128], sizes = [16, 16], strides = [1, 1]} : vector<16x144xf32> to vector<16x16xf32>
    %73 = arith.truncf %72 : vector<16x16xf32> to vector<16x16xbf16>
    %74 = tpu.transpose %71, [1, 0] : vector<16x16xbf16> -> vector<16x16xbf16>
    %cst_29 = arith.constant dense<0.000000e+00> : vector<16x16xf32>
    %75 = tpu.matmul %69, %74, %cst_29 {dimension_numbers = #tpu.dot_dimension_numbers<[1], [0], [0], [1], [0, 0, 1, 1], [], []>} : vector<16x16xbf16>, vector<16x16xbf16>, vector<16x16xf32> -> vector<16x16xf32>
    %cst_30 = arith.constant 2.500000e-01 : f32
    %76 = vector.broadcast %cst_30 : f32 to vector<16x16xf32>
    %77 = arith.mulf %75, %76 : vector<16x16xf32>
    %cst_31 = arith.constant 1.000000e+00 : f32
    %78 = vector.broadcast %cst_31 : f32 to vector<16x16xf32>
    %79 = arith.subf %13, %78 : vector<16x16xf32>
    %cst_32 = arith.constant 1.000000e+06 : f32
    %80 = vector.broadcast %cst_32 : f32 to vector<16x16xf32>
    %81 = arith.mulf %79, %80 : vector<16x16xf32>
    %82 = arith.addf %77, %81 : vector<16x16xf32>
    %cst_33 = arith.constant dense<0xFF800000> : vector<16xf32>
    %83 = vector.multi_reduction <maximumf>, %82, %cst_33 [1] : vector<16x16xf32> to vector<16xf32>
    %84 = vector.shape_cast %83 : vector<16xf32> to vector<16x1xf32>
    %85 = vector.broadcast %84 : vector<16x1xf32> to vector<16x16xf32>
    %86 = arith.subf %82, %85 : vector<16x16xf32>
    %87 = math.exp %86 : vector<16x16xf32>
    %cst_34 = arith.constant dense<0.000000e+00> : vector<16xf32>
    %88 = vector.multi_reduction <add>, %87, %cst_34 [1] : vector<16x16xf32> to vector<16xf32>
    %89 = vector.shape_cast %88 : vector<16xf32> to vector<16x1xf32>
    %90 = tpu.reciprocal %89 {approx = true} : vector<16x1xf32> -> vector<16x1xf32>
    %91 = vector.broadcast %90 : vector<16x1xf32> to vector<16x16xf32>
    %92 = arith.mulf %87, %91 : vector<16x16xf32>
    %93 = arith.truncf %92 : vector<16x16xf32> to vector<16x16xbf16>
    %cst_35 = arith.constant dense<0.000000e+00> : vector<16x16xf32>
    %94 = tpu.matmul %93, %73, %cst_35 {dimension_numbers = #tpu.dot_dimension_numbers<[1], [0], [0], [1], [0, 0, 1, 1], [], []>} : vector<16x16xbf16>, vector<16x16xbf16>, vector<16x16xf32> -> vector<16x16xf32>
    %95 = tpu.concatenate %40, %67, %94 in 1 : vector<16x16xf32>, vector<16x16xf32>, vector<16x16xf32> -> vector<16x48xf32>
    %96 = arith.truncf %95 : vector<16x48xf32> to vector<16x48xbf16>
    %c0_36 = arith.constant 0 : index
    %c0_37 = arith.constant 0 : index
    %97 = vector.load %arg7[%c0_36, %c0_37] : memref<48x48xbf16, #tpu.memory_space<vmem>>, vector<48x48xbf16>
    %cst_38 = arith.constant dense<0.000000e+00> : vector<16x48xf32>
    %98 = tpu.matmul %96, %97, %cst_38 {dimension_numbers = #tpu.dot_dimension_numbers<[1], [0], [0], [1], [0, 0, 1, 1], [], []>} : vector<16x48xbf16>, vector<48x48xbf16>, vector<16x48xf32> -> vector<16x48xf32>
    %c0_39 = arith.constant 0 : index
    %c0_40 = arith.constant 0 : index
    %99 = vector.load %arg8[%c0_39, %c0_40] : memref<1x48xf32, #tpu.memory_space<vmem>>, vector<1x48xf32>
    %100 = vector.broadcast %99 : vector<1x48xf32> to vector<16x48xf32>
    %101 = arith.addf %98, %100 : vector<16x48xf32>
    %102 = arith.addf %101, %1 : vector<16x48xf32>
    %c0_41 = arith.constant 0 : index
    %c0_42 = arith.constant 0 : index
    %103 = vector.load %arg9[%c0_41, %c0_42] : memref<1x48xf32, #tpu.memory_space<vmem>>, vector<1x48xf32>
    %c0_43 = arith.constant 0 : index
    %c0_44 = arith.constant 0 : index
    %104 = vector.load %arg10[%c0_43, %c0_44] : memref<1x48xf32, #tpu.memory_space<vmem>>, vector<1x48xf32>
    %cst_45 = arith.constant dense<0.000000e+00> : vector<16xf32>
    %105 = vector.multi_reduction <add>, %102, %cst_45 [1] : vector<16x48xf32> to vector<16xf32>
    %106 = vector.shape_cast %105 : vector<16xf32> to vector<16x1xf32>
    %cst_46 = arith.constant 4.800000e+01 : f32
    %107 = vector.broadcast %cst_46 : f32 to vector<16x1xf32>
    %108 = arith.divf %106, %107 : vector<16x1xf32>
    %109 = vector.broadcast %108 : vector<16x1xf32> to vector<16x48xf32>
    %110 = arith.subf %102, %109 : vector<16x48xf32>
    %111 = arith.mulf %110, %110 : vector<16x48xf32>
    %cst_47 = arith.constant dense<0.000000e+00> : vector<16xf32>
    %112 = vector.multi_reduction <add>, %111, %cst_47 [1] : vector<16x48xf32> to vector<16xf32>
    %113 = vector.shape_cast %112 : vector<16xf32> to vector<16x1xf32>
    %cst_48 = arith.constant 4.800000e+01 : f32
    %114 = vector.broadcast %cst_48 : f32 to vector<16x1xf32>
    %115 = arith.divf %113, %114 : vector<16x1xf32>
    %cst_49 = arith.constant 9.99999996E-13 : f32
    %116 = vector.broadcast %cst_49 : f32 to vector<16x1xf32>
    %117 = arith.addf %115, %116 : vector<16x1xf32>
    %118 = math.rsqrt %117 : vector<16x1xf32>
    %119 = vector.broadcast %118 : vector<16x1xf32> to vector<16x48xf32>
    %120 = vector.broadcast %103 : vector<1x48xf32> to vector<16x48xf32>
    %121 = arith.mulf %119, %120 : vector<16x48xf32>
    %122 = arith.mulf %110, %121 : vector<16x48xf32>
    %123 = vector.broadcast %104 : vector<1x48xf32> to vector<16x48xf32>
    %124 = arith.addf %122, %123 : vector<16x48xf32>
    %125 = arith.truncf %124 : vector<16x48xf32> to vector<16x48xbf16>
    %c0_50 = arith.constant 0 : index
    %c0_51 = arith.constant 0 : index
    %126 = vector.load %arg11[%c0_50, %c0_51] : memref<48x128xbf16, #tpu.memory_space<vmem>>, vector<48x128xbf16>
    %cst_52 = arith.constant dense<0.000000e+00> : vector<16x128xf32>
    %127 = tpu.matmul %125, %126, %cst_52 {dimension_numbers = #tpu.dot_dimension_numbers<[1], [0], [0], [1], [0, 0, 1, 1], [], []>} : vector<16x48xbf16>, vector<48x128xbf16>, vector<16x128xf32> -> vector<16x128xf32>
    %c0_53 = arith.constant 0 : index
    %c0_54 = arith.constant 0 : index
    %128 = vector.load %arg12[%c0_53, %c0_54] : memref<1x128xf32, #tpu.memory_space<vmem>>, vector<1x128xf32>
    %129 = vector.broadcast %128 : vector<1x128xf32> to vector<16x128xf32>
    %130 = arith.addf %127, %129 : vector<16x128xf32>
    %cst_55 = arith.constant 5.000000e-01 : f32
    %131 = vector.broadcast %cst_55 : f32 to vector<16x128xf32>
    %132 = arith.mulf %130, %131 : vector<16x128xf32>
    %cst_56 = arith.constant 0.707106769 : f32
    %133 = vector.broadcast %cst_56 : f32 to vector<16x128xf32>
    %134 = arith.mulf %130, %133 : vector<16x128xf32>
    %135 = math.absf %134 : vector<16x128xf32>
    %cst_57 = arith.constant 0.327591091 : f32
    %136 = vector.broadcast %cst_57 : f32 to vector<16x128xf32>
    %137 = arith.mulf %136, %135 : vector<16x128xf32>
    %cst_58 = arith.constant 1.000000e+00 : f32
    %138 = vector.broadcast %cst_58 : f32 to vector<16x128xf32>
    %139 = arith.addf %138, %137 : vector<16x128xf32>
    %140 = tpu.reciprocal %139 {approx = true} : vector<16x128xf32> -> vector<16x128xf32>
    %cst_59 = arith.constant 1.06140542 : f32
    %141 = vector.broadcast %cst_59 : f32 to vector<16x128xf32>
    %142 = arith.mulf %141, %140 : vector<16x128xf32>
    %cst_60 = arith.constant 1.45315206 : f32
    %143 = vector.broadcast %cst_60 : f32 to vector<16x128xf32>
    %144 = arith.subf %142, %143 : vector<16x128xf32>
    %145 = arith.mulf %144, %140 : vector<16x128xf32>
    %cst_61 = arith.constant 1.42141378 : f32
    %146 = vector.broadcast %cst_61 : f32 to vector<16x128xf32>
    %147 = arith.addf %145, %146 : vector<16x128xf32>
    %148 = arith.mulf %147, %140 : vector<16x128xf32>
    %cst_62 = arith.constant 0.284496725 : f32
    %149 = vector.broadcast %cst_62 : f32 to vector<16x128xf32>
    %150 = arith.subf %148, %149 : vector<16x128xf32>
    %151 = arith.mulf %150, %140 : vector<16x128xf32>
    %cst_63 = arith.constant 0.254829586 : f32
    %152 = vector.broadcast %cst_63 : f32 to vector<16x128xf32>
    %153 = arith.addf %151, %152 : vector<16x128xf32>
    %154 = arith.mulf %153, %140 : vector<16x128xf32>
    %cst_64 = arith.constant 0.000000e+00 : f32
    %155 = vector.broadcast %cst_64 : f32 to vector<16x128xf32>
    %156 = arith.subf %155, %135 : vector<16x128xf32>
    %157 = arith.mulf %156, %135 : vector<16x128xf32>
    %158 = math.exp %157 : vector<16x128xf32>
    %159 = arith.mulf %154, %158 : vector<16x128xf32>
    %cst_65 = arith.constant 1.000000e+00 : f32
    %160 = vector.broadcast %cst_65 : f32 to vector<16x128xf32>
    %161 = arith.subf %160, %159 : vector<16x128xf32>
    %cst_66 = arith.constant 0.000000e+00 : f32
    %162 = vector.broadcast %cst_66 : f32 to vector<16x128xf32>
    %163 = arith.cmpf olt, %134, %162 : vector<16x128xf32>
    %cst_67 = arith.constant 0.000000e+00 : f32
    %164 = vector.broadcast %cst_67 : f32 to vector<16x128xf32>
    %165 = arith.subf %164, %161 : vector<16x128xf32>
    %166 = arith.select %163, %165, %161 : vector<16x128xi1>, vector<16x128xf32>
    %cst_68 = arith.constant 1.000000e+00 : f32
    %167 = vector.broadcast %cst_68 : f32 to vector<16x128xf32>
    %168 = arith.addf %167, %166 : vector<16x128xf32>
    %169 = arith.mulf %132, %168 : vector<16x128xf32>
    %170 = arith.truncf %169 : vector<16x128xf32> to vector<16x128xbf16>
    %c0_69 = arith.constant 0 : index
    %c0_70 = arith.constant 0 : index
    %171 = vector.load %arg13[%c0_69, %c0_70] : memref<128x48xbf16, #tpu.memory_space<vmem>>, vector<128x48xbf16>
    %cst_71 = arith.constant dense<0.000000e+00> : vector<16x48xf32>
    %172 = tpu.matmul %170, %171, %cst_71 {dimension_numbers = #tpu.dot_dimension_numbers<[1], [0], [0], [1], [0, 0, 1, 1], [], []>} : vector<16x128xbf16>, vector<128x48xbf16>, vector<16x48xf32> -> vector<16x48xf32>
    %c0_72 = arith.constant 0 : index
    %c0_73 = arith.constant 0 : index
    %173 = vector.load %arg14[%c0_72, %c0_73] : memref<1x48xf32, #tpu.memory_space<vmem>>, vector<1x48xf32>
    %174 = vector.broadcast %173 : vector<1x48xf32> to vector<16x48xf32>
    %175 = arith.addf %172, %174 : vector<16x48xf32>
    %176 = arith.addf %175, %124 : vector<16x48xf32>
    %c0_74 = arith.constant 0 : index
    %c0_75 = arith.constant 0 : index
    %177 = vector.load %arg15[%c0_74, %c0_75] : memref<1x48xf32, #tpu.memory_space<vmem>>, vector<1x48xf32>
    %c0_76 = arith.constant 0 : index
    %c0_77 = arith.constant 0 : index
    %178 = vector.load %arg16[%c0_76, %c0_77] : memref<1x48xf32, #tpu.memory_space<vmem>>, vector<1x48xf32>
    %cst_78 = arith.constant dense<0.000000e+00> : vector<16xf32>
    %179 = vector.multi_reduction <add>, %176, %cst_78 [1] : vector<16x48xf32> to vector<16xf32>
    %180 = vector.shape_cast %179 : vector<16xf32> to vector<16x1xf32>
    %cst_79 = arith.constant 4.800000e+01 : f32
    %181 = vector.broadcast %cst_79 : f32 to vector<16x1xf32>
    %182 = arith.divf %180, %181 : vector<16x1xf32>
    %183 = vector.broadcast %182 : vector<16x1xf32> to vector<16x48xf32>
    %184 = arith.subf %176, %183 : vector<16x48xf32>
    %185 = arith.mulf %184, %184 : vector<16x48xf32>
    %cst_80 = arith.constant dense<0.000000e+00> : vector<16xf32>
    %186 = vector.multi_reduction <add>, %185, %cst_80 [1] : vector<16x48xf32> to vector<16xf32>
    %187 = vector.shape_cast %186 : vector<16xf32> to vector<16x1xf32>
    %cst_81 = arith.constant 4.800000e+01 : f32
    %188 = vector.broadcast %cst_81 : f32 to vector<16x1xf32>
    %189 = arith.divf %187, %188 : vector<16x1xf32>
    %cst_82 = arith.constant 9.99999996E-13 : f32
    %190 = vector.broadcast %cst_82 : f32 to vector<16x1xf32>
    %191 = arith.addf %189, %190 : vector<16x1xf32>
    %192 = math.rsqrt %191 : vector<16x1xf32>
    %193 = vector.broadcast %192 : vector<16x1xf32> to vector<16x48xf32>
    %194 = vector.broadcast %177 : vector<1x48xf32> to vector<16x48xf32>
    %195 = arith.mulf %193, %194 : vector<16x48xf32>
    %196 = arith.mulf %184, %195 : vector<16x48xf32>
    %197 = vector.broadcast %178 : vector<1x48xf32> to vector<16x48xf32>
    %198 = arith.addf %196, %197 : vector<16x48xf32>
    %c0_83 = arith.constant 0 : index
    %c0_84 = arith.constant 0 : index
    %c0_85 = arith.constant 0 : index
    %199 = vector.load %arg17[%c0_83, %c0_84, %c0_85] : memref<1x16x48xf32, #tpu.memory_space<vmem>>, vector<1x16x48xf32>
    %200 = vector.shape_cast %199 : vector<1x16x48xf32> to vector<16x48xf32>
    %201 = vector.shape_cast %198 : vector<16x48xf32> to vector<1x16x48xf32>
    tpu.vector_store %arg17[%c0_83, %c0_84, %c0_85], %201 {strides = array<i32>} : memref<1x16x48xf32, #tpu.memory_space<vmem>>, vector<1x16x48xf32>,
    return
  }
  func.func @transform_0(%arg0: i32) -> (i32, i32, i32) {
    %c0_i32 = arith.constant 0 : i32
    %c0_i32_0 = arith.constant 0 : i32
    %c0_i32_1 = arith.constant 0 : i32
    return %arg0, %c0_i32, %c0_i32_0 : i32, i32, i32
  }
  func.func @transform_1(%arg0: i32) -> (i32, i32, i32) {
    %c0_i32 = arith.constant 0 : i32
    %c0_i32_0 = arith.constant 0 : i32
    %c0_i32_1 = arith.constant 0 : i32
    return %arg0, %c0_i32, %c0_i32_0 : i32, i32, i32
  }
  func.func @transform_2(%arg0: i32) -> (i32, i32, i32) {
    %c0_i32 = arith.constant 0 : i32
    %c0_i32_0 = arith.constant 0 : i32
    %c0_i32_1 = arith.constant 0 : i32
    return %arg0, %c0_i32, %c0_i32_0 : i32, i32, i32
  }
  func.func @transform_3(%arg0: i32) -> (i32, i32, i32) {
    %c0_i32 = arith.constant 0 : i32
    %c0_i32_0 = arith.constant 0 : i32
    %c0_i32_1 = arith.constant 0 : i32
    return %arg0, %c0_i32, %c0_i32_0 : i32, i32, i32
  }
  func.func @transform_4(%arg0: i32) -> (i32, i32) {
    %c0_i32 = arith.constant 0 : i32
    %c0_i32_0 = arith.constant 0 : i32
    %c0_i32_1 = arith.constant 0 : i32
    return %c0_i32, %c0_i32_0 : i32, i32
  }
  func.func @transform_5(%arg0: i32) -> (i32, i32) {
    %c0_i32 = arith.constant 0 : i32
    %c0_i32_0 = arith.constant 0 : i32
    %c0_i32_1 = arith.constant 0 : i32
    return %c0_i32, %c0_i32_0 : i32, i32
  }
  func.func @transform_6(%arg0: i32) -> (i32, i32) {
    %c0_i32 = arith.constant 0 : i32
    %c0_i32_0 = arith.constant 0 : i32
    %c0_i32_1 = arith.constant 0 : i32
    return %c0_i32, %c0_i32_0 : i32, i32
  }
  func.func @transform_7(%arg0: i32) -> (i32, i32) {
    %c0_i32 = arith.constant 0 : i32
    %c0_i32_0 = arith.constant 0 : i32
    %c0_i32_1 = arith.constant 0 : i32
    return %c0_i32, %c0_i32_0 : i32, i32
  }
  func.func @transform_8(%arg0: i32) -> (i32, i32) {
    %c0_i32 = arith.constant 0 : i32
    %c0_i32_0 = arith.constant 0 : i32
    %c0_i32_1 = arith.constant 0 : i32
    return %c0_i32, %c0_i32_0 : i32, i32
  }
  func.func @transform_9(%arg0: i32) -> (i32, i32) {
    %c0_i32 = arith.constant 0 : i32
    %c0_i32_0 = arith.constant 0 : i32
    %c0_i32_1 = arith.constant 0 : i32
    return %c0_i32, %c0_i32_0 : i32, i32
  }
  func.func @transform_10(%arg0: i32) -> (i32, i32) {
    %c0_i32 = arith.constant 0 : i32
    %c0_i32_0 = arith.constant 0 : i32
    %c0_i32_1 = arith.constant 0 : i32
    return %c0_i32, %c0_i32_0 : i32, i32
  }
  func.func @transform_11(%arg0: i32) -> (i32, i32) {
    %c0_i32 = arith.constant 0 : i32
    %c0_i32_0 = arith.constant 0 : i32
    %c0_i32_1 = arith.constant 0 : i32
    return %c0_i32, %c0_i32_0 : i32, i32
  }
  func.func @transform_12(%arg0: i32) -> (i32, i32) {
    %c0_i32 = arith.constant 0 : i32
    %c0_i32_0 = arith.constant 0 : i32
    %c0_i32_1 = arith.constant 0 : i32
    return %c0_i32, %c0_i32_0 : i32, i32
  }
  func.func @transform_13(%arg0: i32) -> (i32, i32) {
    %c0_i32 = arith.constant 0 : i32
    %c0_i32_0 = arith.constant 0 : i32
    %c0_i32_1 = arith.constant 0 : i32
    return %c0_i32, %c0_i32_0 : i32, i32
  }
  func.func @transform_14(%arg0: i32) -> (i32, i32) {
    %c0_i32 = arith.constant 0 : i32
    %c0_i32_0 = arith.constant 0 : i32
    %c0_i32_1 = arith.constant 0 : i32
    return %c0_i32, %c0_i32_0 : i32, i32
  }
  func.func @transform_15(%arg0: i32) -> (i32, i32) {
    %c0_i32 = arith.constant 0 : i32
    %c0_i32_0 = arith.constant 0 : i32
    %c0_i32_1 = arith.constant 0 : i32
    return %c0_i32, %c0_i32_0 : i32, i32
  }
  func.func @transform_16(%arg0: i32) -> (i32, i32, i32) {
    %c0_i32 = arith.constant 0 : i32
    %c0_i32_0 = arith.constant 0 : i32
    %c0_i32_1 = arith.constant 0 : i32
    return %arg0, %c0_i32, %c0_i32_0 : i32, i32, i32
  }
}

</mosaic_0001>

<bundles_post_ra>
// kernel: tpu_custom_call.1
= control target key start
LH: loop header
LB: loop body
LE: loop exit
PB: predicated region body
PF: predicated region fallthrough
CT: control target
= control target key end

     0   :  { %s3122_s0 = inlined_call_operand.vmem [shape: f32[2,16,48], index: 0, kind: input, shape index: {}]   ;;  %s3123_s1 = inlined_call_operand.hbm [shape: f32[2,16,16], index: 1, kind: input, shape index: {}]   ;;  %s3124_s2 = inlined_call_operand.hbm [shape: f32[2,16,16], index: 2, kind: input, shape index: {}]   ;;  %s3125_s3 = inlined_call_operand.hbm [shape: f32[2,16,16], index: 3, kind: input, shape index: {}]   ;;  %s3126_s4 = inlined_call_operand.vmem [shape: bf16[48,144], index: 4, kind: input, shape index: {}]   ;;  %s3127_s5 = inlined_call_operand.hbm [shape: f32[1,144], index: 5, kind: input, shape index: {}]   ;;  %s3128_s6 = inlined_call_operand.hbm [shape: bf16[48,48], index: 6, kind: input, shape index: {}]   ;;  %s3129_s7 = inlined_call_operand.hbm [shape: f32[1,48], index: 7, kind: input, shape index: {}]   ;;  %s3130_s8 = inlined_call_operand.hbm [shape: f32[1,48], index: 8, kind: input, shape index: {}]   ;;  %s3131_s9 = inlined_call_operand.hbm [shape: f32[1,48], index: 9, kind: input, shape index: {}]   ;;  %s3132_s10 = inlined_call_operand.vmem [shape: bf16[48,128], index: 10, kind: input, shape index: {}]   ;;  %s3133_s11 = inlined_call_operand.vmem [shape: f32[1,128], index: 11, kind: input, shape index: {}]   ;;  %s3134_s12 = inlined_call_operand.vmem [shape: bf16[128,48], index: 12, kind: input, shape index: {}]   ;;  %s3135_s13 = inlined_call_operand.vmem [shape: f32[1,48], index: 13, kind: input, shape index: {}]   ;;  %s3136_s14 = inlined_call_operand.vmem [shape: f32[1,48], index: 14, kind: input, shape index: {}]   ;;  %s3137_s15 = inlined_call_operand.vmem [shape: f32[1,48], index: 15, kind: input, shape index: {}]   ;;  %s3138_s16 = inlined_call_operand.hbm [shape: f32[2,16,48], index: 16, kind: output, shape index: {}]  }
   0x1   :  { %3163 = sst [smem:[#allocation29_spill]] %s3122_s0 }
   0x2   :  { %3164 = sst [smem:[#allocation30_spill]] %s3127_s5 }
   0x3   :  { %3165 = sst [smem:[#allocation31_spill]] %s3129_s7 }
   0x4   :  { %3166 = sst [smem:[#allocation32_spill]] %s3133_s11 }
   0x5   :  { %3167 = sst [smem:[#allocation33_spill]] %s3134_s12 }
   0x6   :  { %3168 = sst [smem:[#allocation34_spill]] %s3135_s13 }
   0x7   :  { %3169 = sst [smem:[#allocation35_spill]] %s3136_s14 }
   0x8   :  { %3170 = sst [smem:[#allocation36_spill]] %s3137_s15 }
   0x9   :  { %3171 = sst [smem:[#allocation37_spill]] %s3138_s16 }
   0xa   :  { %21 = vsyncpa [#allocation3], 0 }
   0xb   :  { %23 = vsyncpa [#allocation3 + $0x1], 0 }
   0xc   :  { %24 = vsyncpa [#allocation6], 0 }
   0xd   :  { %26 = vsyncpa [#allocation6 + $0x1], 0 }
   0xe   :  { %27 = vsyncpa [#allocation9], 0 }
   0xf   :  { %28 = vsyncpa [#allocation12], 0 }
  0x10   :  { %29 = vsyncpa [#allocation15], 0 }
  0x11   :  { %30 = vsyncpa [#allocation4], 0 }
  0x12   :  { %32 = vsyncpa [#allocation4 + $0x1], 0  ;;  %s2608_s21 = smov 0   ;;  %s2610_s22 = smov 0  }
  0x13   :  { %s2612_s23 = smov 0   ;;  %s2614_s24 = smov 0  }
  0x14 LB: > { %3172 = sst [smem:[#allocation23_spill]] %s2484_s21  ;;  %s2498_s25 = smov [#allocation8]   ;;  %s2496_s24 = sphi %s2614_s24, %s3219_s24   ;;  %s2492_s23 = sphi %s2612_s23, %s3223_s23   ;;  %s2488_s22 = sphi %s2610_s22, %s3222_s22   ;;  %s2484_s21 = sphi %s2608_s21, %s3221_s21  }
  0x15   : > { %3173 = sst [smem:[#allocation24_spill]] %s2496_s24  ;;  %s441_s26 = sshll.u32 %s2498_s25, 4  ;;  %s442_s26 = int_to_ptr.vmem [resolvable:$true] %s441_s26 }
  0x16   : > { %s2629_s27 = sadd.s32 4294967295, %s2496_s24   ;;  %p1817_p0 = scmp.ge.s32.totalorder %s2496_s24, 1 }
  0x17   : > { %p3139_p1 = scmp.eq.s32.totalorder %s2629_s27, 0  ;;  %p425_p3 = scmp.lt.s32.totalorder %s2496_s24, 3 }
  0x18   : > { %s2499_s29 = smov [#allocation11]   ;;  %s2213_s19 = scalar_lea.vmem %s442_s26, 32 }
  0x19   : > { %p2636_p5 = pnand %p1817_p0, %p425_p3  ;;  %s465_s30 = sshll.u32 %s2499_s29, 4  ;;  %s466_s30 = int_to_ptr.vmem [resolvable:$true] %s465_s30 }
  0x1a   : > { %p2214_p9 = scmp.ne.s32.totalorder %s442_s26, %s2213_s19  ;;  %p2221_p12 = scmp.lt.s32.totalorder %s442_s26, %s442_s26 }
  0x1b   : > { %s3174_s28 = scalar_select %p2636_p5, 1, 0 }
  0x1c   : > { %p2034_p6 = pneg %p2636_p5  ;;  %p2222_p13 = scmp.lt.s32.totalorder %s2213_s19, %s2213_s19 }
  0x1e   : > { %p2644_p7 = pnand %p2034_p6, %p3139_p1  ;;  %p2223_p0 = por %p2222_p13, %p2221_p12 }
  0x20   : > { %s3175_s0 = scalar_select %p2644_p7, 1, 0 }
  0x21   : > { %p2651_p8 = pneg %p2644_p7 }
  0x23   : > { %s3176_s18 = scalar_select %p2651_p8, 1, 0 }
  0x24   : > { %p2216_p10 = pnand %p2214_p9, %p2651_p8 }
  0x26   : > { %p2217_p11 = pneg %p2216_p10 }
  0x28   : > { %p2224_p3 = pnand %p2223_p0, %p2217_p11 }
  0x2a   : > { %2227 = shalt.err (!%p2224_p3)
}
  0x2b   : > { %s3177_s5 = sld [smem:[#allocation30_spill]]  ;;  %s2239_s29 = scalar_lea.vmem %s466_s30, 16 }
  0x2c   : > { %p2240_p6 = scmp.ne.s32.totalorder %s466_s30, %s2239_s29  ;;  %s2246_s17 = scalar_lea.vmem %s466_s30, 32 }
  0x2d   : > { %p2247_p9 = scmp.lt.s32.totalorder %s466_s30, %s466_s30  ;;  %p2248_p10 = scmp.lt.s32.totalorder %s2246_s17, %s2239_s29 }
  0x2e   : > { %p2242_p4 = pnand %p2240_p6, %p2651_p8 }
  0x2f   : > { %p2249_p2 = por %p2248_p10, %p2247_p9 }
  0x30   : > { %p2243_p1 = pneg %p2242_p4 }
  0x31   : > { %2037 = dma.hbm_to_vmem [thread:$0]  (!%p2644_p7), %s3177_s5, 32, %s442_s26, [#allocation9]  }
  0x32   : > { %p2250_p5 = pnand %p2249_p2, %p2243_p1 }
  0x34   : > { %2253 = shalt.err (!%p2250_p5)
}
  0x35   : > { %s3178_s7 = sld [smem:[#allocation31_spill]]  ;;  %s2670_s26 = sadd.s32 1, %s2496_s24  }
  0x36   : > { %3179 = sst [smem:[#allocation25_spill]] %s2670_s26  ;;  %s71_s16 = sadd.s32 1, %s2492_s23 }
  0x37   : > { %s68_s17 = ssub.s32 %s2496_s24, %s2670_s26  ;;  %p78_p1 = scmp.ne.s32.totalorder %s2492_s23, %s2488_s22 }
  0x38   : > { %p69_p2 = scmp.eq.s32.totalorder %s68_s17, 0  ;;  %p79_p4 = scmp.eq.s32.totalorder %s2496_s24, 0 }
  0x39   : > { %p84_p5 = scmp.ne.s32.totalorder %s2488_s22, %s2484_s21  ;;  %p3180_p11 = scmp.eq.s32.totalorder %s2629_s27, 1 }
  0x3a   : > { %s2687_s25 = scalar_select %p69_p2, %s2492_s23, %s71_s16  }
  0x3b   : > { %2043 = dma.hbm_to_vmem [thread:$0]  (!%p2644_p7), %s3178_s7, 16, %s466_s30, [#allocation12]  }
  0x3c   : > { %p2682_p12 = por %p3180_p11, %p78_p1  ;;  %3183 = sst [smem:[#allocation27_spill]] %s2687_s25 }
  0x3d   : > { %p80_p13 = por %p79_p4, %p78_p1  ;;  %p3184_p0 = scmp.eq.s32.totalorder %s2629_s27, 0 }
  0x3e   : > { %s3181_s20 = scalar_select %p2682_p12, 1, 0 }
  0x3f   : > { %p2691_p3 = por %p3184_p0, %p84_p5  ;;  %s3186_s29 = sadd.s32 4294967294, %s2496_s24  }
  0x40   : > { %3182 = sst [smem:[#allocation26_spill]] %s3181_s20  ;;  %p418_p6 = scmp.eq.s32.totalorder %s3186_s29, 1 }
  0x41   : > { %s3185_s30 = scalar_select %p2691_p3, 1, 0 }
  0x42   : > { %p2069_p9 = scmp.lt.s32.totalorder %s2496_s24, 2  ;;  %s3148_s19 = sand.u32 1, %s2492_s23  }
  0x43   : > { %s2700_s17 = sshll.u32 %s2496_s24, 8  ;;  %p2702_p10 = por %p418_p6, %p84_p5 }
  0x44   : > { %s2708_s16 = sshll.u32 %s3148_s19, 4  ;;  %p2710_p1 = pnand %p2069_p9, %p80_p13 }
  0x45   : > { %s3187_s5 = scalar_select %p2702_p10, 1, 0 }
  0x46   : > { %s3189_s7 = scalar_select %p2710_p1, 1, 0 }
  0x47   : > { %3188 = sst [smem:[#allocation28_spill]] %s3187_s5  ;;  %s545_s25 = sand.u32 1, %s2496_s24  }
  0x48   : > { %s2719_s21 = scalar_lea.hbm %s3124_s2, %s2700_s17  ;;  %s549_s20 = scalar_lea.vmem [#allocation5], %s2708_s16 }
  0x49   : > { %s556_s5 = sshll.u32 %s549_s20, 4  ;;  %s2500_s19 = smov [#allocation10]   ;;  %s2722_s5 = int_to_ptr.vmem [resolvable:$true] %s556_s5 }
  0x4a   : > { %s2724_s15 = sshll.u32 %s2500_s19, 4  ;;  %s2726_s14 = scalar_lea.sflag [#allocation6], %s545_s25  ;;  %s452_s15 = int_to_ptr.vmem [resolvable:$true] %s2724_s15 }
  0x4b   : > { %s2254_s13 = scalar_lea.hbm %s2719_s21, 256  ;;  %p2732_p4 = pneg %p2710_p1 }
  0x4c   : > { %p2255_p2 = scmp.ne.s32.totalorder %s2719_s21, %s2254_s13  ;;  %s2259_s29 = scalar_lea.hbm %s3124_s2, 512 }
  0x4d   : > { %p2260_p13 = scmp.lt.s32.totalorder %s2719_s21, %s3124_s2  ;;  %p2261_p0 = scmp.lt.s32.totalorder %s2259_s29, %s2254_s13 }
  0x4e   : > { %p2257_p5 = pnand %p2732_p4, %p2255_p2 }
  0x4f   : > { %p2262_p6 = por %p2261_p0, %p2260_p13 }
  0x50   : > { %p2258_p11 = pneg %p2257_p5 }
  0x52   : > { %p2263_p9 = pnand %p2262_p6, %p2258_p11 }
  0x54   : > { %2266 = shalt.err (!%p2263_p9)
}
  0x55   : > { %s2267_s25 = scalar_lea.vmem %s2722_s5, 256  ;;  %s2501_s12 = smov [#allocation5]  }
  0x56   : > { %p2268_p10 = scmp.ne.s32.totalorder %s2722_s5, %s2267_s25  ;;  %s2272_s26 = sshll.u32 %s2501_s12, 4  ;;  %s2273_s26 = int_to_ptr.vmem [resolvable:$false] %s2272_s26 }
  0x57   : > { %s2274_s20 = scalar_lea.vmem %s2273_s26, 512  ;;  %p2275_p12 = scmp.lt.s32.totalorder %s2722_s5, %s2273_s26 }
  0x58   : > { %p2270_p2 = pnand %p2268_p10, %p2732_p4  ;;  %p2276_p3 = scmp.lt.s32.totalorder %s2274_s20, %s2267_s25 }
  0x5a   : > { %p2271_p5 = pneg %p2270_p2  ;;  %p2277_p7 = por %p2276_p3, %p2275_p12 }
  0x5c   : > { %p2278_p8 = pnand %p2277_p7, %p2271_p5 }
  0x5e   : > { %2281 = shalt.err (!%p2278_p8)
}
  0x5f   : > { %s3157_s11 = smov 128   ;;  %s3159_s13 = smov 8  }
  0x60   : > { %2056 = dma.hbm_to_vmem [thread:$0]  (!%p2710_p1), %s2719_s21, 256, %s2722_s5, %s2726_s14, %s3157_s11, %s3157_s11, %s3159_s13  }
  0x61   : > { %s2293_s12 = scalar_lea.vmem %s452_s15, 384  ;;  %p3191_p11 = scmp.ne.s32.totalorder %s3176_s18, 0 }
  0x62   : > { %p2294_p10 = scmp.ne.s32.totalorder %s452_s15, %s2293_s12  ;;  %p2301_p8 = scmp.lt.s32.totalorder %s452_s15, %s452_s15 }
  0x63   : > { %p2302_p3 = scmp.lt.s32.totalorder %s2293_s12, %s2293_s12 }
  0x64   : > { %p2296_p12 = pnand %p2294_p10, %p3191_p11 }
  0x65   : > { %p2303_p13 = por %p2302_p3, %p2301_p8 }
  0x66   : > { %p2297_p7 = pneg %p2296_p12 }
  0x68   : > { %p2304_p0 = pnand %p2303_p13, %p2297_p7 }
  0x6a   : > { %2307 = shalt.err (!%p2304_p0)
}
  0x6b   : > { %s2504_s29 = smov 64   ;;  %s2505_s19 = smov 4  }
  0x6c   : > { %p3192_p6 = scmp.ne.s32.totalorder %s3175_s0, 0  ;;  %s2506_s5 = smov [#allocation13]  }
  0x6d   : > { %s476_s21 = sshll.u32 %s2506_s5, 4  ;;  %s2507_s20 = smov [#allocation14]   ;;  %s477_s21 = int_to_ptr.vmem [resolvable:$true] %s476_s21 }
  0x6e   : > { %2040 = dma.hbm_to_vmem [thread:$0]  (!%p3192_p6), %s3128_s6, 384, %s452_s15, [#allocation9], %s2504_s29, %s2504_s29, %s2505_s19  }
  0x6f   : > { %s487_s11 = sshll.u32 %s2507_s20, 4  ;;  %s2319_s13 = scalar_lea.vmem %s477_s21, 16  ;;  %s488_s11 = int_to_ptr.vmem [resolvable:$true] %s487_s11 }
  0x70   : > { %p2320_p9 = scmp.ne.s32.totalorder %s477_s21, %s2319_s13  ;;  %s2326_s12 = scalar_lea.vmem %s477_s21, 32 }
  0x71   : > { %p2327_p10 = scmp.lt.s32.totalorder %s477_s21, %s477_s21  ;;  %p2328_p12 = scmp.lt.s32.totalorder %s2326_s12, %s2319_s13 }
  0x72   : > { %p2322_p2 = pnand %p2320_p9, %p3191_p11 }
  0x73   : > { %p2329_p7 = por %p2328_p12, %p2327_p10 }
  0x74   : > { %p2323_p5 = pneg %p2322_p2 }
  0x76   : > { %p2330_p8 = pnand %p2329_p7, %p2323_p5 }
  0x78   : > { %2333 = shalt.err (!%p2330_p8)
}
  0x79   : > { %2046 = dma.hbm_to_vmem [thread:$0]  (!%p3192_p6), %s3130_s8, 16, %s477_s21, [#allocation12]  }
  0x7a   : > { %s2345_s29 = scalar_lea.vmem %s488_s11, 16  ;;  %s2352_s19 = scalar_lea.vmem %s488_s11, 32 }
  0x7b   : > { %p2346_p3 = scmp.ne.s32.totalorder %s488_s11, %s2345_s29  ;;  %p2353_p9 = scmp.lt.s32.totalorder %s488_s11, %s488_s11 }
  0x7c   : > { %p2354_p2 = scmp.lt.s32.totalorder %s2352_s19, %s2345_s29 }
  0x7d   : > { %p2348_p13 = pnand %p2346_p3, %p3191_p11 }
  0x7e   : > { %p2355_p1 = por %p2354_p2, %p2353_p9 }
  0x7f   : > { %p2349_p0 = pneg %p2348_p13 }
  0x81   : > { %p2356_p10 = pnand %p2355_p1, %p2349_p0 }
  0x83   : > { %2359 = shalt.err (!%p2356_p10)
}
  0x84   : > { %2049 = dma.hbm_to_vmem [thread:$0]  (!%p3192_p6), %s3131_s9, 16, %s488_s11, [#allocation15]  }
  0x85   : > { %s2784_s21 = scalar_lea.hbm %s3123_s1, %s2700_s17  ;;  %s528_s20 = scalar_lea.vmem [#allocation2], %s2708_s16 }
  0x86   : > { %s535_s12 = sshll.u32 %s528_s20, 4  ;;  %s2793_s15 = scalar_lea.hbm %s3125_s3, %s2700_s17  ;;  %s2787_s12 = int_to_ptr.vmem [resolvable:$true] %s535_s12 }
  0x87   : > { %s3193_s29 = sand.u32 1, %s2492_s23   ;;  %s2360_s11 = scalar_lea.hbm %s2784_s21, 256 }
  0x88   : > { %s525_s19 = scalar_lea.sflag [#allocation3], %s3193_s29  ;;  %p2361_p1 = scmp.ne.s32.totalorder %s2784_s21, %s2360_s11 }
  0x89   : > { %s2365_s18 = scalar_lea.hbm %s3123_s1, 512  ;;  %p2366_p5 = scmp.lt.s32.totalorder %s2784_s21, %s3123_s1 }
  0x8a   : > { %p2363_p11 = pnand %p2361_p1, %p2732_p4  ;;  %p2367_p12 = scmp.lt.s32.totalorder %s2365_s18, %s2360_s11 }
  0x8c   : > { %p2364_p6 = pneg %p2363_p11  ;;  %p2368_p7 = por %p2367_p12, %p2366_p5 }
  0x8e   : > { %p2369_p8 = pnand %p2368_p7, %p2364_p6 }
  0x90   : > { %2372 = shalt.err (!%p2369_p8)
}
  0x91   : > { %s2373_s17 = scalar_lea.vmem %s2787_s12, 256  ;;  %s2508_s0 = smov [#allocation2]  }
  0x92   : > { %p2374_p3 = scmp.ne.s32.totalorder %s2787_s12, %s2373_s17  ;;  %s2378_s25 = sshll.u32 %s2508_s0, 4  ;;  %s2379_s25 = int_to_ptr.vmem [resolvable:$false] %s2378_s25 }
  0x93   : > { %s2380_s29 = scalar_lea.vmem %s2379_s25, 512  ;;  %p2381_p9 = scmp.lt.s32.totalorder %s2787_s12, %s2379_s25 }
  0x94   : > { %p2376_p13 = pnand %p2374_p3, %p2732_p4  ;;  %p2382_p2 = scmp.lt.s32.totalorder %s2380_s29, %s2373_s17 }
  0x96   : > { %p2377_p0 = pneg %p2376_p13  ;;  %p2383_p10 = por %p2382_p2, %p2381_p9 }
  0x98   : > { %p2384_p1 = pnand %p2383_p10, %p2377_p0 }
  0x9a   : > { %2387 = shalt.err (!%p2384_p1)
}
  0x9b   : > { %p3194_p11 = scmp.ne.s32.totalorder %s3189_s7, 0  ;;  %s3195_s11 = smov 8  }
  0x9c   : > { %s3196_s13 = smov 128   ;;  %s570_s26 = scalar_lea.vmem [#allocation7], %s2708_s16 }
  0x9d   : > { %2053 = dma.hbm_to_vmem [thread:$0]  (!%p3194_p11), %s2784_s21, 256, %s2787_s12, %s525_s19, %s3196_s13, %s3196_s13, %s3195_s11  }
  0x9e   : > { %s577_s18 = sshll.u32 %s570_s26, 4  ;;  %s2388_s5 = scalar_lea.hbm %s2793_s15, 256  ;;  %s578_s18 = int_to_ptr.vmem [resolvable:$true] %s577_s18 }
  0x9f   : > { %p2389_p6 = scmp.ne.s32.totalorder %s2793_s15, %s2388_s5  ;;  %s2393_s0 = scalar_lea.hbm %s3125_s3, 512 }
  0xa0   : > { %p2394_p7 = scmp.lt.s32.totalorder %s2793_s15, %s3125_s3  ;;  %p2395_p8 = scmp.lt.s32.totalorder %s2393_s0, %s2388_s5 }
  0xa1   : > { %p2391_p5 = pnand %p2389_p6, %p2732_p4 }
  0xa2   : > { %p2396_p3 = por %p2395_p8, %p2394_p7 }
  0xa3   : > { %p2392_p12 = pneg %p2391_p5 }
  0xa5   : > { %p2397_p13 = pnand %p2396_p3, %p2392_p12 }
  0xa7   : > { %2400 = shalt.err (!%p2397_p13)
}
  0xa8   : > { %s2401_s16 = scalar_lea.vmem %s578_s18, 256  ;;  %s2509_s21 = smov [#allocation7]  }
  0xa9   : > { %p2402_p0 = scmp.ne.s32.totalorder %s578_s18, %s2401_s16  ;;  %s2406_s12 = sshll.u32 %s2509_s21, 4  ;;  %s2407_s12 = int_to_ptr.vmem [resolvable:$false] %s2406_s12 }
  0xaa   : > { %s2408_s19 = scalar_lea.vmem %s2407_s12, 512  ;;  %p2409_p10 = scmp.lt.s32.totalorder %s578_s18, %s2407_s12 }
  0xab   : > { %p2404_p9 = pnand %p2402_p0, %p2732_p4  ;;  %p2410_p1 = scmp.lt.s32.totalorder %s2408_s19, %s2401_s16 }
  0xad   : > { %p2405_p2 = pneg %p2404_p9  ;;  %p2411_p6 = por %p2410_p1, %p2409_p10 }
  0xaf   : > { %p2412_p5 = pnand %p2411_p6, %p2405_p2 }
  0xb1   : > { %2415 = shalt.err (!%p2412_p5)
}
  0xb2   : > { %2059 = dma.hbm_to_vmem [thread:$0]  (!%p3194_p11), %s2793_s15, 256, %s578_s18, %s2726_s14, %s3196_s13, %s3196_s13, %s3195_s11  }
  0xb3   : > { %p3197_p4 = scmp.ne.s32.totalorder %s3174_s28, 0 }
  0xb4   : > { %s2844_s24 = sand.u32 (!%p3197_p4), 1, %s2488_s22   ;;  %p3198_p12 = scmp.ne.s32.totalorder (!%p3197_p4), %s3185_s30, 0 }
  0xb5   : > { %589 = sbr.rel (%p3197_p4) target bundleno = 2673 (0xa71), region = 84  ;;  %s2847_s26 = sshll.u32 (!%p3197_p4), %s2844_s24, 4 }
  0xb6   : > { %s592_s5 = scalar_lea.sflag (!%p3197_p4), [#allocation3], %s2844_s24  ;;  %s595_s7 = scalar_lea.vmem (!%p3197_p4), [#allocation2], %s2847_s26 }
  0xba   : > { %2459 = dma.done.wait (%p3198_p12), %s592_s5, 256  }
  0xbb   : > { %2461 = vsyncadd (%p3198_p12), %s592_s5, 4294967040  ;;  %s600_s14 = sand.u32 1, %s2629_s27   ;;  %s604_s15 = scalar_lea.vmem [#allocation5], %s2847_s26 }
  0xbc   : > { %s601_s28 = scalar_lea.sflag [#allocation6], %s600_s14 }
  0xbd   : > { %2463 = dma.done.wait (%p3198_p12), %s601_s28, 512  }
  0xbe   : > { %2465 = vsyncadd (%p3198_p12), %s601_s28, 4294966784  ;;  %s613_s11 = scalar_lea.vmem [#allocation7], %s2847_s26  ;;  %p3199_p11 = scmp.eq.s32.totalorder %s2629_s27, 0 }
  0xc0   : > { %2467 = dma.done.wait (%p3199_p11), [#allocation9], 416   ;;  %p3200_p7 = pmov %p3199_p11 }
  0xc2   : > { %2469 = vsyncadd (%p3200_p7), [#allocation9], 4294966880  ;;  %p3201_p8 = pmov %p3200_p7 }
  0xc3   : > { %p3202_p3 = pmov %p3200_p7 }
  0xc4   : > { %2471 = dma.done.wait (%p3201_p8), [#allocation12], 32  }
  0xc5   : > { %2473 = vsyncadd (%p3202_p3), [#allocation12], 4294967264  ;;  %p3203_p13 = pmov %p3202_p3 }
  0xc6   : > { %p3204_p0 = pmov %p3202_p3 }
  0xc7   : > { %2475 = dma.done.wait (%p3203_p13), [#allocation15], 16  }
  0xc8   : > { %2477 = vsyncadd (%p3204_p0), [#allocation15], 4294967280  ;;  %p697_p9 = scmp.lt.s32.totalorder %s2629_s27, 1  ;;  %v2510_v0 = vmov 0   ;;  %v2139_v1 = vld [vmem:[%s3126_s4 + $0x24] ss:$8 sps:$4 sm:$0xff]   ;;  %v714_v10 = vlaneseq }
  0xc9   : > { %790 = vmatprep.mubr.bf16.mxu1 %v2510_v0  ;;  %v2141_v2 = vld [vmem:[%s3126_s4 + $0x20] ss:$8 sps:$4 sm:$0xff]   ;;  %768 = vmatprep.subr.bf16.mxu1 %v2139_v1  ;;  %v2142_v3 = vld [vmem:[%s3126_s4 + $0x14] ss:$8 sps:$4 sm:$0xff]   ;;  %s3205_s12 = sld [smem:[#allocation29_spill]]  ;;  %vm754_vm0 = vcmask 392192  }
  0xca   : > { %s698_s30 = scalar_select %p697_p9, %s2629_s27, 1  ;;  %769 = vmatpush1.bf16.msra.mxu1 %v2141_v2  ;;  %v2144_v4 = vld [vmem:[%s3126_s4 + $0x10] ss:$8 sps:$4 sm:$0xff]   ;;  %v2145_v5 = vld [vmem:[%s3126_s4 + $0x4] ss:$8 sps:$4 sm:$0xff]   ;;  %v2904_v11 = vshrl.u32 %v714_v10, 7 }
  0xcb   : > { %770 = vmatprep.subr.bf16.mxu1 %v2142_v3  ;;  %v2147_v6 = vld [vmem:[%s3126_s4] ss:$8 sps:$4 sm:$0xff]   ;;  %v2511_v12 = vmov 0.0   ;;  %vm2512_vm1 = vmmov 0   ;;  %s2514_s17 = smov 80   ;;  %s2515_s0 = smov 48  }
  0xcc   : > { %s1899_s13 = sshll.u32 %s698_s30, 4  ;;  %1942 = vmatprep.subr.bf16.mxu0 %v2511_v12  ;;  %v716_v13 = vsub.s32 0, %v2904_v11  ;;  %v2909_v14 = vld [vmem:[#allocation8] sm:$0x3]  ;;  %1944 = vmatprep.mubr.msk.bf16.mxu0 %vm2512_vm1, %v2511_v12  ;;  %s2516_s25 = smov 64   ;;  %vm811_vm2 = vcmask 130048  }
  0xcd   : > { %s2517_s29 = smov 96   ;;  %v801_v30 = vld [vmem:[%s595_s7] sm:$0xff]  ;;  %v802_v32 = vld [vmem:[%s595_s7 + $0x8] sm:$0xff]  ;;  %s2518_s7 = smov 16   ;;  %vm1211_vm3 = vcmask 261120  }
  0xce   : > { %771 = vmatpush1.bf16.msra.mxu1 %v2144_v4  ;;  %v717_v16 = vrot.slane %v2909_v14, %v716_v13  ;;  %v1853_v31 = vadd.f32 -1.0, %v801_v30  ;;  %v803_v34 = vld [vmem:[%s604_s15] sm:$0xff]  ;;  %v1854_v36 = vadd.f32 -1.0, %v802_v32  ;;  %v804_v38 = vld [vmem:[%s604_s15 + $0x8] sm:$0xff]  ;;  %s2519_s15 = smov 32   ;;  %s3206_s30 = sld [smem:[#allocation33_spill]] }
  0xcf   : > { %s701_s19 = scalar_lea.vmem %s3205_s12, %s1899_s13  ;;  %772 = vmatprep.subr.bf16.mxu1 %v2145_v5  ;;  %s2513_s13 = smov 112   ;;  %v1857_v40 = vadd.f32 -1.0, %v803_v34  ;;  %v1858_v44 = vadd.f32 -1.0, %v804_v38  ;;  %v805_v47 = vld [vmem:[%s613_s11] sm:$0xff]  ;;  %v806_v58 = vld [vmem:[%s613_s11 + $0x8] sm:$0xff] }
  0xd0   : > { %v2897_v7 = vld [vmem:[%s701_s19] sm:$0xff]  ;;  %v2899_v8 = vld [vmem:[%s701_s19 + $0x8] sm:$0xff]  ;;  %v863_v35 = vmul.f32 1000000.0, %v1853_v31  ;;  %v864_v43 = vmul.f32 1000000.0, %v1854_v36 }
  0xd1   : > { %v705_v9 = vpack.c.bf16 %v2899_v8, %v2897_v7  ;;  %v992_v51 = vmul.f32 1000000.0, %v1857_v40  ;;  %v993_v55 = vmul.f32 1000000.0, %v1858_v44  ;;  %v1861_v56 = vadd.f32 -1.0, %v805_v47  ;;  %s3207_s28 = sld [smem:[#allocation32_spill]] }
  0xd2   : > { %773 = vmatpush1.bf16.msra.mxu1 %v2147_v6  ;;  %v1862_v1 = vadd.f32 -1.0, %v806_v58  ;;  %s3211_s11 = sld [smem:[#allocation26_spill]]  ;;  %s1900_s16 = sshll.u32 %s2629_s27, 8 }
  0xd3   : > { %1930 = vmatprep.subr.bf16.mxu1 %v2511_v12  ;;  %v1122_v0 = vmul.f32 1000000.0, %v1861_v56  ;;  %s696_s21 = scalar_lea.vmem [#allocation16], %s2847_s26  ;;  %s3212_s14 = sld [smem:[#allocation37_spill]] }
  0xd4   : > { %v1123_v10 = vmul.f32 1000000.0, %v1862_v1  ;;  %s1640_s12 = sshll.u32 %s696_s21, 4  ;;  %s1627_s18 = scalar_lea.sflag [#allocation4], %s2844_s24  ;;  %s3078_s12 = int_to_ptr.vmem [resolvable:$true] %s1640_s12 }
  0xd5   : > { %1851 = vmatmul.mubr.msk.bf16.vlgmr.msra.gmra.mxu1 %vm754_vm0, %v705_v9  ;;  %s2416_s27 = scalar_lea.vmem %s3078_s12, 256  ;;  %s2520_s26 = smov [#allocation16]  }
  0xd6   : > { %1932 = vmatprep.mubr.msk.bf16.mxu1 %vm2512_vm1, %v2511_v12  ;;  %p2417_p2 = scmp.ne.s32.totalorder %s3078_s12, %s2416_s27  ;;  %s2420_s20 = sshll.u32 %s2520_s26, 4  ;;  %s2421_s20 = int_to_ptr.vmem [resolvable:$false] %s2420_s20 }
  0xd7   : > { %p2423_p5 = scmp.lt.s32.totalorder %s3078_s12, %s2421_s20 }
  0xd8   : > { %p3213_p10 = scmp.ne.s32.totalorder %s3211_s11, 0 }
  0xda   : > { %p2418_p1 = pnand %p2417_p2, %p3213_p10 }
  0xdc   : > { %p2419_p6 = pneg %p2418_p1 }
 0x195   : > { %v792_v15 = vpop.f32.mrf.mxu1 }
 0x196   : > { %v793_v19 = vadd.f32 %v792_v15, %v717_v16 }
 0x197   : > { %v2912_v17 = vpop.f32.mrf.mxu1 }
 0x199   : > { %v796_v18 = vpop.f32.mrf.mxu1 }
 0x19a   : > { %v797_v20 = vadd.f32 %v796_v18, %v717_v16 }
 0x19b   : > { %v2945_v33 = vpop.f32.mrf.mxu1 }
 0x19c   : > { %v2918_v21 = vpack.c.bf16 %v797_v20, %v793_v19 }
 0x19e   : > { %937 = vrot.lane.b32.xlu1 %v2918_v21, %s2513_s13  ;;  %809 = vrot.lane.b32.xlu0 %v2918_v21, %s2514_s17  ;;  %s3208_s13 = sld [smem:[#allocation34_spill]] }
 0x1a2   : > { %1069 = vrot.lane.b32.xlu1 %v2918_v21, %s2515_s0  ;;  %939 = vrot.lane.b32.xlu0 %v2918_v21, %s2516_s25  ;;  %s3209_s25 = sld [smem:[#allocation35_spill]] }
 0x1a6   : > { %1067 = vrot.lane.b32.xlu0 %v2918_v21, %s2517_s29 }
 0x210   : > { %v810_v22 = vpop.permute.xlu0 %809  ;;  %v938_v24 = vpop.permute.xlu1 %937 }
 0x211   : > { %v816_v23 = vsel %vm811_vm2, %v810_v22, 0 }
 0x212   : > { %1931 = vmatpush3.bf16.xpose.msra.mxu1 %v816_v23 }
 0x213   : > { %1936 = vmatprep.subr.bf16.mxu1 %v2511_v12 }
 0x214   : > { %v940_v25 = vpop.permute.xlu0 %939  ;;  %v1070_v27 = vpop.permute.xlu1 %1069 }
 0x215   : > { %v945_v26 = vsel %vm811_vm2, %v940_v25, 0  ;;  %v1075_v28 = vsel %vm811_vm2, %v1070_v27, 0 }
 0x216   : > { %1943 = vmatpush3.bf16.xpose.msra.mxu0 %v945_v26 }
 0x217   : > { %1954 = vmatprep.subr.bf16.mxu0 %v2511_v12 }
 0x218   : > { %v1068_v29 = vpop.permute.xlu0 %1067 }
 0x219   : > { %1933 = vmatmul.mubr.msk.bf16.vlgmr.msra.gmra.mxu1 %vm811_vm2, %v2918_v21 }
 0x21a   : > { %1938 = vmatprep.mubr.msk.bf16.mxu1 %vm2512_vm1, %v2511_v12 }
 0x21d   : > { %1945 = vmatmul.mubr.msk.bf16.vlgmr.msra.gmra.mxu0 %vm811_vm2, %v938_v24 }
 0x21e   : > { %1955 = vmatpush3.bf16.xpose.msra.mxu0 %v1075_v28  ;;  %1956 = vmatprep.mubr.msk.bf16.mxu0 %vm2512_vm1, %v2511_v12 }
 0x21f   : > { %1966 = vmatprep.subr.bf16.mxu0 %v2511_v12 }
 0x225   : > { %1957 = vmatmul.mubr.msk.bf16.vlgmr.msra.gmra.mxu0 %vm811_vm2, %v1068_v29 }
 0x226   : > { %1972 = vmatprep.mubr.msk.bf16.mxu0 %vm2512_vm1, %v2511_v12 }
 0x2d9   : > { %v852_v37 = vpop.f32.mrf.mxu1 }
 0x2da   : > { %v859_v39 = vmul.f32 0.25, %v852_v37 }
 0x2db   : > { %v1934_v41 = vpop.f32.mrf.mxu1 }
 0x2dc   : > { %v865_v42 = vadd.f32 %v863_v35, %v859_v39 }
 0x2dd   : > { %v855_v45 = vpop.f32.mrf.mxu1  ;;  %v981_v46 = vpop.f32.mrf.mxu0 }
 0x2de   : > { %v860_v48 = vmul.f32 0.25, %v855_v45  ;;  %v988_v49 = vmul.f32 0.25, %v981_v46  ;;  %v867_v50 = vsel %vm811_vm2, %v865_v42, -inf }
 0x2df   : > { %868 = vmax.xlane.f32.xlu1 %v867_v50  ;;  %v1935_v52 = vpop.f32.mrf.mxu1  ;;  %v1946_v53 = vpop.f32.mrf.mxu0 }
 0x2e0   : > { %v866_v54 = vadd.f32 %v864_v43, %v860_v48  ;;  %v994_v61 = vadd.f32 %v992_v51, %v988_v49 }
 0x2e1   : > { %v984_v57 = vpop.f32.mrf.mxu0 }
 0x2e2   : > { %v989_v59 = vmul.f32 0.25, %v984_v57  ;;  %v870_v60 = vsel %vm811_vm2, %v866_v54, -inf  ;;  %v996_v4 = vsel %vm811_vm2, %v994_v61, -inf }
 0x2e3   : > { %871 = vmax.xlane.f32.xlu0 %v870_v60  ;;  %v1947_v62 = vpop.f32.mrf.mxu0 }
 0x2e4   : > { %v995_v63 = vadd.f32 %v993_v55, %v989_v59 }
 0x2e5   : > { %v1111_v2 = vpop.f32.mrf.mxu0 }
 0x2e6   : > { %v1118_v3 = vmul.f32 0.25, %v1111_v2  ;;  %v999_v5 = vsel %vm811_vm2, %v995_v63, -inf }
 0x2e7   : > { %997 = vmax.xlane.f32.xlu0 %v996_v4  ;;  %1000 = vmax.xlane.f32.xlu1 %v999_v5  ;;  %v1958_v6 = vpop.f32.mrf.mxu0 }
 0x2e8   : > { %v1124_v9 = vadd.f32 %v1122_v0, %v1118_v3 }
 0x2e9   : > { %v1114_v13 = vpop.f32.mrf.mxu0 }
 0x2ea   : > { %v1119_v15 = vmul.f32 0.25, %v1114_v13  ;;  %v1126_v16 = vsel %vm811_vm2, %v1124_v9, -inf }
 0x2eb   : > { %1127 = vmax.xlane.f32.xlu0 %v1126_v16  ;;  %v1959_v18 = vpop.f32.mrf.mxu0 }
 0x2ec   : > { %v1125_v19 = vadd.f32 %v1123_v10, %v1119_v15 }
 0x2ee   : > { %v1129_v20 = vsel %vm811_vm2, %v1125_v19, -inf }
 0x2ef   : > { %1130 = vmax.xlane.f32.xlu1 %v1129_v20  ;;  %v2148_v20 = vld [vmem:[#allocation10 + $0x10] sm:$0xff]  }
 0x2f0   : > { %1967 = vmatpush3.bf16.msra.mxu0 %v2148_v20 }
 0x2f1   : > { %1968 = vmatprep.subr.bf16.mxu0 %v2511_v12 }
 0x368   : > { %v869_v22 = vpop.xlane.xlu1 %868 }
 0x369   : > { %v873_v23 = vsub.f32 %v865_v42, %v869_v22 }
 0x36b   : > { %v875_v24 = vmul.f32 1.442695, %v873_v23  ;;  %v2149_v23 = vld [vmem:[#allocation10 + $0x8] sm:$0xff]  }
 0x36c   : > { %v872_v25 = vpop.xlane.xlu0 %871  ;;  %1969 = vmatpush3.bf16.msra.mxu0 %v2149_v23 }
 0x36d   : > { %2162 = vpow2.f32 %v875_v24  ;;  %v874_v26 = vsub.f32 %v866_v54, %v872_v25  ;;  %1970 = vmatprep.subr.bf16.mxu0 %v2511_v12 }
 0x36f   : > { %v877_v27 = vmul.f32 1.442695, %v874_v26 }
 0x370   : > { %v1001_v28 = vpop.xlane.xlu1 %1000  ;;  %v998_v29 = vpop.xlane.xlu0 %997 }
 0x371   : > { %2164 = vpow2.f32 %v877_v27  ;;  %v1003_v30 = vsub.f32 %v995_v63, %v1001_v28  ;;  %v1002_v31 = vsub.f32 %v994_v61, %v998_v29  ;;  %v720_v63 = vsub.s32 1, %v2904_v11  ;;  %v2150_v27 = vld [vmem:[#allocation10] sm:$0xff]  }
 0x372   : > { %1971 = vmatpush3.bf16.msra.mxu0 %v2150_v27  ;;  %v2156_v27 = vld [vmem:[%s3206_s30 + $0x28] sm:$0xff]  }
 0x373   : > { %v1006_v32 = vmul.f32 1.442695, %v1003_v30  ;;  %v1004_v34 = vmul.f32 1.442695, %v1002_v31  ;;  %v721_v4 = vrot.slane %v2909_v14, %v720_v63  ;;  %1986 = vmatprep.subr.bf16.mxu0 %v2511_v12 }
 0x374   : > { %v1128_v35 = vpop.xlane.xlu0 %1127 }
 0x375   : > { %2166 = vpow2.f32 %v1006_v32  ;;  %v1132_v36 = vsub.f32 %v1124_v9, %v1128_v35  ;;  %v799_v9 = vadd.f32 %v2945_v33, %v721_v4  ;;  %v795_v11 = vadd.f32 %v2912_v17, %v721_v4  ;;  %v2153_v4 = vld [vmem:[%s3132_s10] sm:$0xff]  }
 0x376   : > { %2168 = vpow2.f32 %v1004_v34 }
 0x377   : > { %v1134_v37 = vmul.f32 1.442695, %v1132_v36  ;;  %v1066_v15 = vpack.c.bf16 %v799_v9, %v795_v11 }
 0x378   : > { %v1131_v38 = vpop.xlane.xlu1 %1130 }
 0x379   : > { %2170 = vpow2.f32 %v1134_v37  ;;  %v1133_v39 = vsub.f32 %v1125_v19, %v1131_v38 }
 0x37a   : > { %v2163_v40 = vpop.eup %2162 }
 0x37b   : > { %v1136_v41 = vmul.f32 1.442695, %v1133_v39  ;;  %v879_v42 = vsel %vm811_vm2, %v2163_v40, 0.0 }
 0x37c   : > { %880 = vadd.xlane.f32.xlu0 %v879_v42 }
 0x37d   : > { %2172 = vpow2.f32 %v1136_v41 }
 0x37e   : > { %v2165_v43 = vpop.eup %2164 }
 0x37f   : > { %v882_v44 = vsel %vm811_vm2, %v2165_v43, 0.0 }
 0x380   : > { %883 = vadd.xlane.f32.xlu1 %v882_v44 }
 0x382   : > { %v2167_v45 = vpop.eup %2166 }
 0x383   : > { %v2169_v46 = vpop.eup %2168  ;;  %v1011_v47 = vsel %vm811_vm2, %v2167_v45, 0.0 }
 0x384   : > { %1012 = vadd.xlane.f32.xlu1 %v1011_v47  ;;  %v1008_v48 = vsel %vm811_vm2, %v2169_v46, 0.0 }
 0x385   : > { %1009 = vadd.xlane.f32.xlu0 %v1008_v48  ;;  %v1864_v48 = vld [vmem:[#allocation11] ss:$0 sm:$0xff] }
 0x386   : > { %v2171_v49 = vpop.eup %2170 }
 0x387   : > { %v1138_v50 = vsel %vm811_vm2, %v2171_v49, 0.0 }
 0x389   : > { %1139 = vadd.xlane.f32.xlu0 %v1138_v50 }
 0x38a   : > { %v2173_v51 = vpop.eup %2172 }
 0x38b   : > { %v1141_v52 = vsel %vm811_vm2, %v2173_v51, 0.0 }
 0x38c   : > { %1142 = vadd.xlane.f32.xlu1 %v1141_v52 }
 0x39d   : > { %1019 = vrot.lane.b32.xlu1 %v2918_v21, %s2518_s7 }
 0x39f   : > { %890 = vrot.lane.b32.xlu0 %v2918_v21, %s2519_s15 }
 0x405   : > { %v881_v53 = vpop.xlane.xlu0 %880 }
 0x406   : > { %2174 = vrcp.f32 %v881_v53 }
 0x409   : > { %v884_v54 = vpop.xlane.xlu1 %883 }
 0x40a   : > { %2176 = vrcp.f32 %v884_v54 }
 0x40d   : > { %v1013_v55 = vpop.xlane.xlu1 %1012 }
 0x40e   : > { %2178 = vrcp.f32 %v1013_v55  ;;  %v1010_v56 = vpop.xlane.xlu0 %1009 }
 0x40f   : > { %2180 = vrcp.f32 %v1010_v56 }
 0x412   : > { %v1140_v57 = vpop.xlane.xlu0 %1139 }
 0x413   : > { %v2175_v58 = vpop.eup %2174 }
 0x414   : > { %v887_v62 = vmul.f32 %v2175_v58, %v2163_v40 }
 0x415   : > { %v1143_v59 = vpop.xlane.xlu1 %1142 }
 0x416   : > { %2182 = vrcp.f32 %v1143_v59  ;;  %v891_v60 = vpop.permute.xlu0 %890 }
 0x417   : > { %v2177_v61 = vpop.eup %2176  ;;  %1937 = vmatpush3.bf16.msra.mxu1 %v891_v60  ;;  %2184 = vrcp.f32 %v1140_v57 }
 0x418   : > { %1948 = vmatprep.subr.bf16.mxu1 %v2511_v12  ;;  %v888_v21 = vmul.f32 %v2177_v61, %v2165_v43 }
 0x419   : > { %v1020_v3 = vpop.permute.xlu1 %1019 }
 0x41a   : > { %v889_v0 = vpack.c.bf16 %v888_v21, %v887_v62 }
 0x41b   : > { %v2179_v1 = vpop.eup %2178 }
 0x41c   : > { %v2181_v2 = vpop.eup %2180  ;;  %1939 = vmatmul.mubr.msk.bf16.vlgmr.msra.gmra.mxu1 %vm811_vm2, %v889_v0  ;;  %v1017_v6 = vmul.f32 %v2179_v1, %v2167_v45 }
 0x41d   : > { %1949 = vmatpush3.bf16.msra.mxu1 %v1020_v3  ;;  %1950 = vmatprep.mubr.msk.bf16.mxu1 %vm2512_vm1, %v2511_v12  ;;  %v1016_v5 = vmul.f32 %v2181_v2, %v2169_v46  ;;  %v2152_v3 = vld [vmem:[%s3132_s10 + $0x8] sm:$0xff]  }
 0x41e   : > { %1960 = vmatprep.subr.bf16.mxu1 %v2511_v12 }
 0x41f   : > { %v1018_v10 = vpack.c.bf16 %v1017_v6, %v1016_v5 }
 0x423   : > { %v2183_v13 = vpop.eup %2182 }
 0x424   : > { %1951 = vmatmul.mubr.msk.bf16.vlgmr.msra.gmra.mxu1 %vm811_vm2, %v1018_v10  ;;  %v2185_v16 = vpop.eup %2184  ;;  %v1147_v14 = vmul.f32 %v2183_v13, %v2173_v51 }
 0x425   : > { %1961 = vmatpush3.bf16.msra.mxu1 %v1066_v15  ;;  %1962 = vmatprep.mubr.msk.bf16.mxu1 %vm2512_vm1, %v2511_v12  ;;  %v1146_v18 = vmul.f32 %v2185_v16, %v2171_v49  ;;  %v1869_v15 = vld [vmem:[#allocation13] ss:$0 sm:$0xff] }
 0x426   : > { %1976 = vmatprep.subr.bf16.mxu1 %v2511_v12 }
 0x427   : > { %v1148_v19 = vpack.c.bf16 %v1147_v14, %v1146_v18 }
 0x42c   : > { %1963 = vmatmul.mubr.msk.bf16.vlgmr.msra.gmra.mxu1 %vm811_vm2, %v1148_v19 }
 0x42d   : > { %1982 = vmatprep.mubr.msk.bf16.mxu1 %vm2512_vm1, %v2511_v12 }
 0x4dc   : > { %v930_v17 = vpop.f32.mrf.mxu1 }
 0x4de   : > { %v1940_v33 = vpop.f32.mrf.mxu1 }
 0x4df   : > { %v1870_v33 = vld [vmem:[#allocation14] ss:$0 sm:$0xff] }
 0x4e0   : > { %v933_v22 = vpop.f32.mrf.mxu1 }
 0x4e2   : > { %v1941_v24 = vpop.f32.mrf.mxu1 }
 0x4e4   : > { %v1059_v25 = vpop.f32.mrf.mxu1 }
 0x4e6   : > { %v1952_v26 = vpop.f32.mrf.mxu1 }
 0x4e7   : > { %v2155_v26 = vld [vmem:[%s3206_s30 + $0x30] sm:$0xff]  }
 0x4e8   : > { %v1062_v28 = vpop.f32.mrf.mxu1 }
 0x4e9   : > { %v2129_v29 = vpack.i.bf16 %v1062_v28, %v1059_v25  ;;  %v2154_v25 = vld [vmem:[%s3206_s30 + $0x38] sm:$0xff]   ;;  %v2157_v28 = vld [vmem:[%s3206_s30 + $0x20] sm:$0xff]  }
 0x4ea   : > { %v1953_v30 = vpop.f32.mrf.mxu1 }
 0x4eb   : > { %2130 = vrot.lane.b32.xlu1 %v2129_v29, %s2518_s7  ;;  %v2158_v29 = vld [vmem:[%s3206_s30 + $0x18] sm:$0xff]   ;;  %v2159_v30 = vld [vmem:[%s3206_s30 + $0x10] sm:$0xff]  }
 0x4ec   : > { %v1186_v31 = vpop.f32.mrf.mxu1 }
 0x4ee   : > { %v1964_v32 = vpop.f32.mrf.mxu1 }
 0x4ef   : > { %v2161_v32 = vld [vmem:[%s3206_s30] sm:$0xff]  }
 0x4f0   : > { %v1189_v34 = vpop.f32.mrf.mxu1 }
 0x4f1   : > { %v2134_v35 = vpack.i.bf16 %v1189_v34, %v1186_v31  ;;  %v2160_v31 = vld [vmem:[%s3206_s30 + $0x8] sm:$0xff]   ;;  %v1871_v34 = vld [vmem:[%s3207_s28] ss:$0 sm:$0xff]  ;;  %s3076_s28 = scalar_lea.hbm %s3212_s14, %s1900_s16 }
 0x4f2   : > { %v1965_v36 = vpop.f32.mrf.mxu1 }
 0x4f3   : > { %2135 = vrot.lane.b32.xlu0 %v2134_v35, %s2519_s15  ;;  %s3210_s15 = sld [smem:[#allocation36_spill]] }
 0x55d   : > { %v2131_v37 = vpop.permute.xlu1 %2130 }
 0x55e   : > { %v2133_v38 = vunpack.i.h.bf16 %v2131_v37  ;;  %v2132_v39 = vunpack.i.l.bf16 %v2131_v37 }
 0x560   : > { %v1210_v43 = vsel %vm811_vm2, %v933_v22, %v2133_v38  ;;  %v1209_v44 = vsel %vm811_vm2, %v930_v17, %v2132_v39 }
 0x565   : > { %v2136_v40 = vpop.permute.xlu0 %2135 }
 0x566   : > { %v2138_v41 = vunpack.i.h.bf16 %v2136_v40  ;;  %v2137_v42 = vunpack.i.l.bf16 %v2136_v40 }
 0x568   : > { %v1213_v45 = vsel %vm1211_vm3, %v1210_v43, %v2138_v41  ;;  %v1212_v46 = vsel %vm1211_vm3, %v1209_v44, %v2137_v42 }
 0x569   : > { %v1214_v47 = vpack.c.bf16 %v1213_v45, %v1212_v46 }
 0x56b   : > { %1973 = vmatmul.mubr.msk.bf16.vlgmr.msra.gmra.mxu0 %vm754_vm0, %v1214_v47 }
 0x56c   : > { %2002 = vmatprep.mubr.msk.bf16.mxu0 %vm2512_vm1, %v2511_v12  ;;  %1987 = vmatpush3.bf16.msra.mxu0 %v2154_v25 }
 0x56d   : > { %1988 = vmatprep.subr.bf16.mxu0 %v2511_v12 }
 0x570   : > { %1989 = vmatpush3.bf16.msra.mxu0 %v2155_v26 }
 0x571   : > { %1990 = vmatprep.subr.bf16.mxu0 %v2511_v12 }
 0x574   : > { %1991 = vmatpush3.bf16.msra.mxu0 %v2156_v27 }
 0x575   : > { %1992 = vmatprep.subr.bf16.mxu0 %v2511_v12 }
 0x578   : > { %1993 = vmatpush3.bf16.msra.mxu0 %v2157_v28 }
 0x579   : > { %1994 = vmatprep.subr.bf16.mxu0 %v2511_v12 }
 0x57c   : > { %1995 = vmatpush3.bf16.msra.mxu0 %v2158_v29  ;;  %v1880_v29 = vld [vmem:[%s3208_s13] ss:$0 sm:$0xff]  ;;  %s2422_s13 = scalar_lea.vmem %s2421_s20, 512 }
 0x57d   : > { %1996 = vmatprep.subr.bf16.mxu0 %v2511_v12  ;;  %p2424_p4 = scmp.lt.s32.totalorder %s2422_s13, %s2416_s27 }
 0x57f   : > { %p2425_p12 = por %p2424_p4, %p2423_p5 }
 0x580   : > { %1997 = vmatpush3.bf16.msra.mxu0 %v2159_v30 }
 0x581   : > { %1998 = vmatprep.subr.bf16.mxu0 %v2511_v12  ;;  %p2426_p11 = pnand %p2425_p12, %p2419_p6 }
 0x584   : > { %1999 = vmatpush3.bf16.msra.mxu0 %v2160_v31 }
 0x585   : > { %2000 = vmatprep.subr.bf16.mxu0 %v2511_v12 }
 0x588   : > { %2001 = vmatpush3.bf16.msra.mxu0 %v2161_v32 }
 0x62b   : > { %v1283_v49 = vpop.f32.mrf.mxu0 }
 0x62c   : > { %v1284_v50 = vadd.f32 %v1864_v48, %v1283_v49 }
 0x62d   : > { %v1974_v51 = vpop.f32.mrf.mxu0 }
 0x62e   : > { %v1290_v52 = vadd.f32 %v1284_v50, %v2897_v7 }
 0x62f   : > { %v1286_v53 = vpop.f32.mrf.mxu0 }
 0x630   : > { %v1287_v54 = vadd.f32 %v1864_v48, %v1286_v53  ;;  %v1294_v55 = vsel %vm754_vm0, %v1290_v52, 0.0 }
 0x631   : > { %1295 = vadd.xlane.f32.xlu1 %v1294_v55  ;;  %v1975_v56 = vpop.f32.mrf.mxu0 }
 0x632   : > { %v1291_v57 = vadd.f32 %v1287_v54, %v2899_v8  ;;  %v2151_v8 = vld [vmem:[%s3132_s10 + $0x10] sm:$0xff]  }
 0x633   : > { %1977 = vmatpush3.bf16.msra.mxu1 %v2151_v8 }
 0x634   : > { %v1297_v58 = vsel %vm754_vm0, %v1291_v57, 0.0  ;;  %1978 = vmatprep.subr.bf16.mxu1 %v2511_v12 }
 0x635   : > { %1298 = vadd.xlane.f32.xlu0 %v1297_v58 }
 0x637   : > { %1979 = vmatpush3.bf16.msra.mxu1 %v2152_v3 }
 0x638   : > { %1980 = vmatprep.subr.bf16.mxu1 %v2511_v12 }
 0x63b   : > { %1981 = vmatpush3.bf16.msra.mxu1 %v2153_v4 }
 0x6ba   : > { %v1296_v59 = vpop.xlane.xlu1 %1295 }
 0x6bb   : > { %v1301_v60 = vmul.f32 0.020833334, %v1296_v59 }
 0x6bd   : > { %v1303_v61 = vsub.f32 %v1290_v52, %v1301_v60 }
 0x6be   : > { %v1299_v62 = vpop.xlane.xlu0 %1298 }
 0x6bf   : > { %v1302_v21 = vmul.f32 0.020833334, %v1299_v62  ;;  %v1305_v63 = vmul.f32 %v1303_v61, %v1303_v61 }
 0x6c1   : > { %v1304_v0 = vsub.f32 %v1291_v57, %v1302_v21  ;;  %v1307_v7 = vsel %vm754_vm0, %v1305_v63, 0.0 }
 0x6c2   : > { %1308 = vadd.xlane.f32.xlu0 %v1307_v7 }
 0x6c3   : > { %v1306_v1 = vmul.f32 %v1304_v0, %v1304_v0 }
 0x6c5   : > { %v1310_v2 = vsel %vm754_vm0, %v1306_v1, 0.0 }
 0x6c6   : > { %1311 = vadd.xlane.f32.xlu1 %v1310_v2 }
 0x74b   : > { %v1309_v5 = vpop.xlane.xlu0 %1308 }
 0x74c   : > { %v1313_v6 = vmul.f32 0.020833334, %v1309_v5 }
 0x74e   : > { %v1315_v9 = vadd.f32 1e-12, %v1313_v6 }
 0x74f   : > { %v1312_v11 = vpop.xlane.xlu1 %1311 }
 0x750   : > { %2186 = vrsqrt.f32 %v1315_v9  ;;  %v1314_v10 = vmul.f32 0.020833334, %v1312_v11 }
 0x752   : > { %v1316_v13 = vadd.f32 1e-12, %v1314_v10 }
 0x754   : > { %2188 = vrsqrt.f32 %v1316_v13 }
 0x75d   : > { %v2187_v16 = vpop.eup %2186 }
 0x75e   : > { %v1325_v14 = vmul.f32 %v2187_v16, %v1869_v15 }
 0x760   : > { %v1327_v17 = vmul.f32 %v1325_v14, %v1303_v61 }
 0x761   : > { %v2189_v18 = vpop.eup %2188 }
 0x762   : > { %v1326_v19 = vmul.f32 %v2189_v18, %v1869_v15  ;;  %v3014_v22 = vadd.f32 %v1870_v33, %v1327_v17 }
 0x764   : > { %v1328_v20 = vmul.f32 %v1326_v19, %v1304_v0 }
 0x766   : > { %v3016_v23 = vadd.f32 %v1870_v33, %v1328_v20 }
 0x768   : > { %v1337_v24 = vpack.c.bf16 %v3016_v23, %v3014_v22 }
 0x76a   : > { %1983 = vmatmul.mubr.msk.bf16.vlgmr.msra.gmra.mxu1 %vm754_vm0, %v1337_v24 }
 0x82a   : > { %v1406_v35 = vpop.f32.mrf.mxu1 }
 0x82b   : > { %v1407_v36 = vadd.f32 %v1871_v34, %v1406_v35 }
 0x82c   : > { %v1984_v37 = vpop.f32.mrf.mxu1 }
 0x82d   : > { %v1415_v38 = vmul.f32 0.70710677, %v1407_v36  ;;  %v1413_v20 = vmul.f32 0.5, %v1407_v36 }
 0x82e   : > { %v1409_v39 = vpop.f32.mrf.mxu1 }
 0x82f   : > { %v1417_v40 = vand.u32 2147483647, %v1415_v38  ;;  %v1410_v41 = vadd.f32 %v1871_v34, %v1409_v39  ;;  %vm1455_vm4 = vcmp.lt.f32.partialorder %v1415_v38, 0.0 }
 0x830   : > { %v1985_v42 = vpop.f32.mrf.mxu1 }
 0x831   : > { %v1419_v43 = vmul.f32 0.3275911, %v1417_v40  ;;  %v1416_v44 = vmul.f32 0.70710677, %v1410_v41  ;;  %v1443_v48 = vsub.f32 0.0, %v1417_v40  ;;  %v1414_v24 = vmul.f32 0.5, %v1410_v41 }
 0x833   : > { %v1421_v12 = vadd.f32 1.0, %v1419_v43  ;;  %v1418_v45 = vand.u32 2147483647, %v1416_v44  ;;  %v1445_v49 = vmul.f32 %v1443_v48, %v1417_v40  ;;  %vm1456_vm5 = vcmp.lt.f32.partialorder %v1416_v44, 0.0 }
 0x835   : > { %2190 = vrcp.f32 %v1421_v12  ;;  %v1420_v46 = vmul.f32 0.3275911, %v1418_v45  ;;  %v1444_v50 = vsub.f32 0.0, %v1418_v45  ;;  %v1447_v53 = vmul.f32 1.442695, %v1445_v49 }
 0x837   : > { %v1422_v47 = vadd.f32 1.0, %v1420_v46  ;;  %v1446_v54 = vmul.f32 %v1444_v50, %v1418_v45 }
 0x839   : > { %2192 = vrcp.f32 %v1422_v47  ;;  %v1449_v59 = vmul.f32 1.442695, %v1446_v54  ;;  %v1889_v54 = vld [vmem:[%s3209_s25] ss:$0 sm:$0xff] }
 0x83a   : > { %2194 = vpow2.f32 %v1447_v53 }
 0x83b   : > { %2196 = vpow2.f32 %v1449_v59 }
 0x842   : > { %v2191_v51 = vpop.eup %2190 }
 0x843   : > { %v1425_v52 = vmul.f32 1.0614054, %v2191_v51 }
 0x845   : > { %v1876_v55 = vadd.f32 -1.4531521, %v1425_v52 }
 0x846   : > { %v2193_v56 = vpop.eup %2192 }
 0x847   : > { %v1429_v57 = vmul.f32 %v2191_v51, %v1876_v55  ;;  %v1426_v58 = vmul.f32 1.0614054, %v2193_v56  ;;  %v2195_v5 = vpop.eup %2194 }
 0x848   : > { %v2197_v13 = vpop.eup %2196 }
 0x849   : > { %v1431_v60 = vadd.f32 1.4214138, %v1429_v57  ;;  %v1877_v61 = vadd.f32 -1.4531521, %v1426_v58  ;;  %v1890_v57 = vld [vmem:[%s3210_s15] ss:$0 sm:$0xff] }
 0x84b   : > { %v1433_v62 = vmul.f32 %v2191_v51, %v1431_v60  ;;  %v1430_v21 = vmul.f32 %v2193_v56, %v1877_v61 }
 0x84d   : > { %v1878_v63 = vadd.f32 -0.28449672, %v1433_v62  ;;  %v1432_v0 = vadd.f32 1.4214138, %v1430_v21 }
 0x84f   : > { %v1437_v7 = vmul.f32 %v2191_v51, %v1878_v63  ;;  %v1434_v1 = vmul.f32 %v2193_v56, %v1432_v0 }
 0x851   : > { %v1439_v2 = vadd.f32 0.2548296, %v1437_v7  ;;  %v1879_v8 = vadd.f32 -0.28449672, %v1434_v1 }
 0x853   : > { %v1441_v3 = vmul.f32 %v2191_v51, %v1439_v2  ;;  %v1438_v4 = vmul.f32 %v2193_v56, %v1879_v8 }
 0x855   : > { %v1451_v6 = vmul.f32 %v2195_v5, %v1441_v3  ;;  %v1440_v9 = vadd.f32 0.2548296, %v1438_v4 }
 0x857   : > { %v1453_v11 = vsub.f32 1.0, %v1451_v6  ;;  %v1442_v10 = vmul.f32 %v2193_v56, %v1440_v9 }
 0x859   : > { %v1457_v15 = vsub.f32 0.0, %v1453_v11  ;;  %v1452_v16 = vmul.f32 %v2197_v13, %v1442_v10 }
 0x85b   : > { %v1459_v14 = vsel %vm1455_vm4, %v1457_v15, %v1453_v11  ;;  %v1454_v18 = vsub.f32 1.0, %v1452_v16 }
 0x85c   : > { %v1461_v17 = vadd.f32 1.0, %v1459_v14 }
 0x85d   : > { %v1458_v19 = vsub.f32 0.0, %v1454_v18 }
 0x85e   : > { %v1463_v26 = vmul.f32 %v1461_v17, %v1413_v20 }
 0x85f   : > { %v1460_v33 = vsel %vm1456_vm5, %v1458_v19, %v1454_v18 }
 0x860   : > { %v1462_v25 = vadd.f32 1.0, %v1460_v33 }
 0x862   : > { %v1464_v27 = vmul.f32 %v1462_v25, %v1414_v24 }
 0x864   : > { %v1465_v28 = vpack.c.bf16 %v1464_v27, %v1463_v26 }
 0x866   : > { %2003 = vmatmul.mubr.bf16.vlgmr.msra.gmra.mxu0 %v1465_v28 }
 0x926   : > { %v1571_v30 = vpop.f32.mrf.mxu0 }
 0x927   : > { %v1572_v31 = vadd.f32 %v1880_v29, %v1571_v30 }
 0x928   : > { %v2004_v32 = vpop.f32.mrf.mxu0 }
 0x929   : > { %v1578_v34 = vadd.f32 %v1572_v31, %v3014_v22 }
 0x92a   : > { %v1574_v35 = vpop.f32.mrf.mxu0 }
 0x92b   : > { %v1575_v37 = vadd.f32 %v1880_v29, %v1574_v35  ;;  %v1582_v38 = vsel %vm754_vm0, %v1578_v34, 0.0 }
 0x92c   : > { %1583 = vadd.xlane.f32.xlu0 %v1582_v38  ;;  %v2005_v36 = vpop.f32.mrf.mxu0 }
 0x92d   : > { %v1579_v39 = vadd.f32 %v1575_v37, %v3016_v23 }
 0x92f   : > { %v1585_v40 = vsel %vm754_vm0, %v1579_v39, 0.0 }
 0x930   : > { %1586 = vadd.xlane.f32.xlu1 %v1585_v40 }
 0x9b5   : > { %v1584_v41 = vpop.xlane.xlu0 %1583 }
 0x9b6   : > { %v1588_v42 = vmul.f32 0.020833334, %v1584_v41 }
 0x9b8   : > { %v1590_v43 = vsub.f32 %v1578_v34, %v1588_v42 }
 0x9b9   : > { %v1587_v44 = vpop.xlane.xlu1 %1586 }
 0x9ba   : > { %v1589_v12 = vmul.f32 0.020833334, %v1587_v44  ;;  %v1592_v45 = vmul.f32 %v1590_v43, %v1590_v43 }
 0x9bc   : > { %v1591_v46 = vsub.f32 %v1579_v39, %v1589_v12  ;;  %v1594_v22 = vsel %vm754_vm0, %v1592_v45, 0.0 }
 0x9bd   : > { %1595 = vadd.xlane.f32.xlu0 %v1594_v22 }
 0x9be   : > { %v1593_v47 = vmul.f32 %v1591_v46, %v1591_v46 }
 0x9c0   : > { %v1597_v48 = vsel %vm754_vm0, %v1593_v47, 0.0 }
 0x9c1   : > { %1598 = vadd.xlane.f32.xlu1 %v1597_v48 }
 0xa46   : > { %v1596_v49 = vpop.xlane.xlu0 %1595 }
 0xa47   : > { %v1600_v23 = vmul.f32 0.020833334, %v1596_v49 }
 0xa49   : > { %v1602_v50 = vadd.f32 1e-12, %v1600_v23 }
 0xa4a   : > { %v1599_v51 = vpop.xlane.xlu1 %1598 }
 0xa4b   : > { %2198 = vrsqrt.f32 %v1602_v50  ;;  %v1601_v52 = vmul.f32 0.020833334, %v1599_v51 }
 0xa4d   : > { %v1603_v53 = vadd.f32 1e-12, %v1601_v52 }
 0xa4f   : > { %2200 = vrsqrt.f32 %v1603_v53 }
 0xa58   : > { %v2199_v55 = vpop.eup %2198 }
 0xa59   : > { %v1612_v56 = vmul.f32 %v2199_v55, %v1889_v54 }
 0xa5b   : > { %v1614_v58 = vmul.f32 %v1612_v56, %v1590_v43 }
 0xa5c   : > { %v2201_v59 = vpop.eup %2200 }
 0xa5d   : > { %v1622_v60 = vadd.f32 %v1890_v57, %v1614_v58  ;;  %v1613_v61 = vmul.f32 %v2201_v59, %v1889_v54 }
 0xa5f   : > { %v1615_v62 = vmul.f32 %v1613_v61, %v1591_v46  ;;  %1624 = vst.msk [vmem:[%s696_s21] sm:$0xff] %vm754_vm0, %v1622_v60 }
 0xa61   : > { %v1623_v21 = vadd.f32 %v1890_v57, %v1615_v62 }
 0xa63   : > { %1625 = vst.msk [vmem:[%s696_s21 + $0x8] sm:$0xff] %vm754_vm0, %v1623_v21 }
 0xa64   : > { %2429 = shalt.err (!%p2426_p11)
}
 0xa65   : > { %s2430_s17 = scalar_lea.hbm %s3076_s28, 256  ;;  %s2434_s29 = scalar_lea.hbm %s3212_s14, 512 }
 0xa66   : > { %p2431_p7 = scmp.ne.s32.totalorder %s3076_s28, %s2430_s17  ;;  %p2435_p13 = scmp.lt.s32.totalorder %s3076_s28, %s3212_s14 }
 0xa67   : > { %p2436_p0 = scmp.lt.s32.totalorder %s2434_s29, %s2430_s17 }
 0xa68   : > { %p2432_p8 = pnand %p2431_p7, %p3213_p10 }
 0xa69   : > { %p2437_p9 = por %p2436_p0, %p2435_p13 }
 0xa6a   : > { %p2433_p3 = pneg %p2432_p8 }
 0xa6c   : > { %p2438_p2 = pnand %p2437_p9, %p2433_p3 }
 0xa6e   : > { %2441 = shalt.err (!%p2438_p2)
}
 0xa6f   : > { %s2521_s16 = smov 128   ;;  %s2522_s21 = smov 8  }
 0xa70   : > { %2032 = dma.vmem_to_hbm [thread:$0]  (%p3213_p10), %s3078_s12, 256, %s3076_s28, %s1627_s18, %s2521_s16, %s2521_s16, %s2522_s21  }
 0xa71 PF: > { %s3214_s19 = sld [smem:[#allocation23_spill]] }
 0xa72   : > { %s3215_s5 = sld [smem:[#allocation28_spill]] }
 0xa73   : > { %s3216_s27 = sld [smem:[#allocation24_spill]] }
 0xa77   : > { %s1655_s26 = sand.u32 1, %s3214_s19  }
 0xa78   : > { %p3217_p1 = scmp.ne.s32.totalorder %s3215_s5, 0  ;;  %s1656_s20 = scalar_lea.sflag [#allocation4], %s1655_s26 }
 0xa79   : > { %p3218_p6 = scmp.ge.s32.totalorder %s3216_s27, 2 }
 0xa7b   : > { %p2061_p5 = pnand %p3218_p6, %p3217_p1 }
 0xa7d   : > { %p2062_p4 = pneg %p2061_p5 }
 0xa7f   : > { %2479 = dma.done.wait (%p2062_p4), %s1656_s20, 256  }
 0xa80   : > { %2481 = vsyncadd (%p2062_p4), %s1656_s20, 4294967040  ;;  %s3219_s24 = sld [smem:[#allocation25_spill]]  ;;  %s3221_s21 = smov %s2488_s22 }
 0xa81   : > { %s3220_s13 = sld [smem:[#allocation27_spill]]  ;;  %s3222_s22 = smov %s2492_s23 }
 0xa86   : > { %p35_p12 = scmp.ge.s32.totalorder %s3219_s24, 4  }
 0xa87   : > { %s3223_s23 = smov %s3220_s13 }
 0xa88   :  { %37 = sbr.rel (!%p35_p12) target bundleno = 20 (0x14), region = 176 }
 0xa8d   :  { %1661 = vsyncpa [#allocation3], 1 }
 0xa8e   :  { %1663 = vsyncpa [#allocation3 + $0x1], 1 }
 0xa8f   :  { %1664 = vsyncpa [#allocation6], 1 }
 0xa90   :  { %1666 = vsyncpa [#allocation6 + $0x1], 1 }
 0xa91   :  { %1667 = vsyncpa [#allocation9], 1 }
 0xa92   :  { %1668 = vsyncpa [#allocation12], 1 }
 0xa93   :  { %1669 = vsyncpa [#allocation15], 1 }
 0xa94   :  { %1670 = vsyncpa [#allocation4], 1 }
 0xa95   :  { %1672 = vsyncpa [#allocation4 + $0x1], 1 }

</bundles_post_ra>
